<compile_context>
chip_gen: v5e
topology: v5e:2x2
jax: 0.10.0
libtpu: 0.0.40
codegen_flags: <defaults>
</compile_context>

<pallas_src>
import functools
import math

import jax
import jax.numpy as jnp
from jax.experimental import pallas as pl
from jax.experimental.pallas import tpu as pltpu

# Layers whose contraction dim is at most this run on the VPU as rank-K
# outer-product accumulation instead of the MXU.
_SMALL_K = 8


# ----------------------------- Pallas kernel --------------------------------
def _cnmp_kernel(TB, Ncp, Ntp, H, OUT, Cdim, min_std,
                 ctx_ref, maskn_ref, tgt_ref, cond_ref,
                 we1, be1, we2, be2, we3, be3, we4, be4,
                 wd1_rep, wd1_tgt, wd1_cond, bd1,
                 wd2, bd2, wd3, bd3, wd4, bd4,
                 out_ref):
    f32 = jnp.float32
    bf16 = jnp.bfloat16

    def dot_mxu(act_f32, w_ref):
        # bf16 operands on the MXU, f32 accumulation.
        return jnp.dot(act_f32.astype(bf16), w_ref[...],
                       preferred_element_type=f32)

    def dot_small_k(act_f32, w_ref):
        # Rank-K VPU path for tiny contraction dims: one broadcasted
        # multiply-reduce, everything stays f32 (no lane-sparse bf16 cast,
        # no degenerate MXU push).
        w = w_ref[...].astype(f32)
        return jnp.sum(act_f32[:, :, None] * w[None, :, :], axis=1)

    def dot_any(act_f32, w_ref):
        if w_ref.shape[0] <= _SMALL_K:
            return dot_small_k(act_f32, w_ref)
        return dot_mxu(act_f32, w_ref)

    # ---- encoder MLP on flattened context rows: (TB*Ncp, in+out) -> (TB*Ncp, H)
    # Ncp is a multiple of 8 so this reshape is a pure view.
    x = ctx_ref[...].reshape(TB * Ncp, -1)
    h = jnp.maximum(dot_any(x, we1) + be1[...], 0.0)
    h = jnp.maximum(dot_mxu(h, we2) + be2[...], 0.0)
    h = jnp.maximum(dot_mxu(h, we3) + be3[...], 0.0)
    enc = dot_mxu(h, we4) + be4[...]                               # (TB*Ncp, H) f32

    # ---- masked mean over context points (mask pre-normalized in wrapper)
    enc3 = enc.reshape(TB, Ncp, H)
    rep = jnp.sum(enc3 * maskn_ref[...], axis=1)                   # (TB, H)

    # ---- decoder layer 1: cat([rep, targets, cond]) @ Wd1 as split matmuls
    rep_part = dot_mxu(rep, wd1_rep)                               # (TB, H) on MXU
    cond2 = cond_ref[...].reshape(TB, Cdim)                        # f32
    base = rep_part + bd1[...] + dot_small_k(cond2, wd1_cond)      # (TB, H)

    tgt = tgt_ref[...].reshape(TB * Ntp, -1)
    tgt_part = dot_any(tgt, wd1_tgt)                               # (TB*Ntp, H) VPU
    h1 = jnp.maximum(tgt_part.reshape(TB, Ntp, H) + base[:, None, :], 0.0)

    hd = h1.reshape(TB * Ntp, H)
    hd = jnp.maximum(dot_mxu(hd, wd2) + bd2[...], 0.0)
    hd = jnp.maximum(dot_mxu(hd, wd3) + bd3[...], 0.0)

    # ---- fused mean / log-std head: one (H, 2*OUT) matmul, one 2D store
    out = dot_mxu(hd, wd4) + bd4[...]                              # (TB*Ntp, 2*OUT) f32
    # numerically-stable softplus (f32) + min_std for the std columns
    soft = jnp.maximum(out, 0.0) + jnp.log1p(jnp.exp(-jnp.abs(out))) + min_std
    col = jax.lax.broadcasted_iota(jnp.int32, out.shape, 1)
    out_ref[...] = jnp.where(col < OUT, out, soft)                 # [:OUT]=mean, [OUT:]=std


# ------------------------------- wrapper -------------------------------------
def _round_up(n, m):
    return ((n + m - 1) // m) * m


def cnmp_forward(params, min_std, contexts, targets, condition, ctx_mask=None,
                 *, max_rows_per_step=2048):
    B, Nc, ctx_feat = contexts.shape
    _, Nt, tgt_feat = targets.shape
    H = params["we1"].shape[1]
    OUT = params["wd4"].shape[1] // 2
    Cdim = params["wd1_cond"].shape[0]

    # --- pad Nc / Nt to multiples of 8 so every in-kernel reshape is a view
    Ncp = max(8, _round_up(Nc, 8))
    Ntp = max(8, _round_up(Nt, 8))

    if ctx_mask is None:
        ctx_mask = jnp.ones((B, Nc), jnp.float32)
    ctx_mask = ctx_mask.astype(jnp.float32)
    mask_p = jnp.pad(ctx_mask, ((0, 0), (0, Ncp - Nc)))            # zeros for pad rows
    # Pre-normalize the mask so the kernel needs no divide.
    safe_norm = jnp.maximum(jnp.sum(mask_p, axis=1, keepdims=True), 1.0)
    mask_n = (mask_p / safe_norm).reshape(B, Ncp, 1)

    ctx = jnp.pad(contexts.astype(jnp.float32), ((0, 0), (0, Ncp - Nc), (0, 0)))
    tgt = jnp.pad(targets.astype(jnp.float32), ((0, 0), (0, Ntp - Nt), (0, 0)))
    cond3 = condition.astype(jnp.float32).reshape(B, 1, Cdim)

    # --- batch tile sizing (bigger tiles, 256-row alignment, >=2 grid steps)
    maxN = max(Ncp, Ntp, 1)
    TB = max(1, min(B, max_rows_per_step // maxN))
    if B >= 2:
        TB = min(TB, pl.cdiv(B, 2))        # grid >= 2 so both v7x TCs get work
    align = 256 // math.gcd(256, maxN)     # rows-per-step multiple of 256 if possible
    if TB >= align:
        TB = (TB // align) * align
    grid = (pl.cdiv(B, TB),)

    # --- bf16 weights for the MXU; tiny-K weights (VPU path) and biases stay f32
    bf16 = jnp.bfloat16
    w = dict(params)
    for k in ("we1", "we2", "we3", "we4", "wd1_rep", "wd1_tgt", "wd2", "wd3", "wd4"):
        if w[k].shape[0] > _SMALL_K:
            w[k] = w[k].astype(bf16)

    ops = [ctx, mask_n, tgt, cond3,
           w["we1"], w["be1"], w["we2"], w["be2"],
           w["we3"], w["be3"], w["we4"], w["be4"],
           w["wd1_rep"], w["wd1_tgt"], w["wd1_cond"], w["bd1"],
           w["wd2"], w["bd2"], w["wd3"], w["bd3"],
           w["wd4"], w["bd4"]]

    weight_bytes = int(sum(a.size * a.dtype.itemsize for a in ops[4:]))

    # --- VMEM budget: double-buffered batch blocks + weights + live intermediates
    blk_in = 4 * (TB * Ncp * ctx_feat + TB * Ncp + TB * Ntp * tgt_feat + TB * Cdim)
    blk_out = 4 * TB * Ntp * 2 * OUT
    rows = TB * maxN
    interm = 4 * rows * H * 8                        # ~8 live f32 (rows, H) tensors
    vmem_need = 2 * (blk_in + blk_out) + 2 * weight_bytes + interm
    vmem_limit = int(min(max(2 * vmem_need, 32 * 1024 * 1024), 48 * 1024 * 1024))

    # --- cost estimate (advisory, for XLA scheduling around the custom call)
    flops = 2 * B * (Ncp * (ctx_feat * H + 3 * H * H)
                     + H * H + Cdim * H
                     + Ntp * (tgt_feat * H + 2 * H * H + H * 2 * OUT))
    cost = pl.CostEstimate(
        flops=int(flops),
        transcendentals=int(2 * B * Ntp * 2 * OUT),
        bytes_accessed=int(4 * (ctx.size + mask_n.size + tgt.size + cond3.size
                                + B * Ntp * 2 * OUT) + weight_bytes))

    def batch_spec(arr):
        s = arr.shape
        return pl.BlockSpec((TB,) + s[1:], lambda b: (b,) + (0,) * (len(s) - 1))

    def resident_spec(arr, single_buffer):
        s = arr.shape
        if single_buffer:
            # constant index_map => never re-DMAs after step 0; one buffer suffices
            return pl.BlockSpec(s, lambda b: (0,) * len(s),
                                pipeline_mode=pl.Buffered(1))
        return pl.BlockSpec(s, lambda b: (0,) * len(s))

    kernel = functools.partial(_cnmp_kernel, TB, Ncp, Ntp, H, OUT, Cdim, float(min_std))

    def run(single_buffer_weights):
        in_specs = ([batch_spec(a) for a in ops[:4]]
                    + [resident_spec(a, single_buffer_weights) for a in ops[4:]])
        # lane-ordered 2D output slab: (B*Ntp, 2*OUT), one block per batch tile
        out_specs = pl.BlockSpec((TB * Ntp, 2 * OUT), lambda b: (b, 0))
        return pl.pallas_call(
            kernel,
            out_shape=jax.ShapeDtypeStruct((B * Ntp, 2 * OUT), jnp.float32),
            grid=grid,
            in_specs=in_specs,
            out_specs=out_specs,
            compiler_params=pltpu.CompilerParams(
                dimension_semantics=("parallel",),
                vmem_limit_bytes=vmem_limit),
            cost_estimate=cost,
        )(*ops)

    try:
        out2d = run(True)
    except Exception:
        # Fallback for JAX builds that reject Buffered(1) on pallas_call specs.
        out2d = run(False)

    out = out2d.reshape(B, Ntp, 2 * OUT)[:, :Nt, :]
    return out[..., :OUT], out[..., OUT:]


# --------------------------- parameter creation -------------------------------
def _linear_init(key, fan_in, fan_out):
    kw, kb = jax.random.split(key)
    bound = 1.0 / jnp.sqrt(jnp.float32(fan_in))
    wmat = jax.random.uniform(kw, (fan_in, fan_out), jnp.float32, -bound, bound)
    bvec = jax.random.uniform(kb, (1, fan_out), jnp.float32, -bound, bound)
    return wmat, bvec


def init_cnmp_params(key, input_dim, output_dim, hidden, condition_dim):
    keys = jax.random.split(key, 8)
    p = {}
    # encoder: (in+out)->H, H->H, H->H, H->H (ReLU after first three)
    p["we1"], p["be1"] = _linear_init(keys[0], input_dim + output_dim, hidden)
    p["we2"], p["be2"] = _linear_init(keys[1], hidden, hidden)
    p["we3"], p["be3"] = _linear_init(keys[2], hidden, hidden)
    p["we4"], p["be4"] = _linear_init(keys[3], hidden, hidden)
    # decoder: (H+in+cond)->H, H->H, H->H, H->2*out (ReLU after first three)
    wd1, p["bd1"] = _linear_init(keys[4], hidden + input_dim + condition_dim, hidden)
    p["wd1_rep"] = wd1[:hidden]
    p["wd1_tgt"] = wd1[hidden:hidden + input_dim]
    p["wd1_cond"] = wd1[hidden + input_dim:]
    p["wd2"], p["bd2"] = _linear_init(keys[5], hidden, hidden)
    p["wd3"], p["bd3"] = _linear_init(keys[6], hidden, hidden)
    p["wd4"], p["bd4"] = _linear_init(keys[7], hidden, 2 * output_dim)
    return p


# ------------------------- pure-JAX reference (torch mirror) ------------------
def ref_forward(params, min_std, contexts, targets, condition, ctx_mask=None):
    def relu(v):
        return jnp.maximum(v, 0.0)

    h = relu(contexts @ params["we1"] + params["be1"])
    h = relu(h @ params["we2"] + params["be2"])
    h = relu(h @ params["we3"] + params["be3"])
    enc = h @ params["we4"] + params["be4"]                                   # (B, Nc, H)

    if ctx_mask is not None:
        masked_sum = jnp.sum(enc * ctx_mask[..., None], axis=1)
        safe_norm = jnp.maximum(jnp.sum(ctx_mask, axis=1, keepdims=True), 1.0)
        rep = masked_sum / safe_norm
    else:
        rep = jnp.mean(enc, axis=1)

    B, Nt, _ = targets.shape
    wd1 = jnp.concatenate([params["wd1_rep"], params["wd1_tgt"], params["wd1_cond"]], axis=0)
    rep_e = jnp.broadcast_to(rep[:, None, :], (B, Nt, rep.shape[-1]))
    cond_e = jnp.broadcast_to(condition[:, None, :], (B, Nt, condition.shape[-1]))
    dec_in = jnp.concatenate([rep_e, targets, cond_e], axis=-1)
    h = relu(dec_in @ wd1 + params["bd1"])
    h = relu(h @ params["wd2"] + params["bd2"])
    h = relu(h @ params["wd3"] + params["bd3"])
    out = h @ params["wd4"] + params["bd4"]
    OUT = params["wd4"].shape[1] // 2
    means = out[..., :OUT]
    log_stds = out[..., OUT:]
    stds = jnp.maximum(log_stds, 0.0) + jnp.log1p(jnp.exp(-jnp.abs(log_stds))) + min_std
    return means, stds


# ---------------------------------- main --------------------------------------
if __name__ == "__main__":
    INPUT_DIM = 2       # e.g. time + phase
    OUTPUT_DIM = 1
    HIDDEN = 128
    COND_DIM = 1
    MIN_STD = 0.1
    B, NC, NT = 2, 8, 8

    root = jax.random.PRNGKey(0)
    kp, kc, kt, kd, km = jax.random.split(root, 5)

    params = init_cnmp_params(kp, INPUT_DIM, OUTPUT_DIM, HIDDEN, COND_DIM)

    contexts = jax.random.normal(kc, (B, NC, INPUT_DIM + OUTPUT_DIM), jnp.float32)
    targets = jax.random.normal(kt, (B, NT, INPUT_DIM), jnp.float32)
    condition = jax.random.normal(kd, (B, COND_DIM), jnp.float32)
    ctx_mask = (jax.random.uniform(km, (B, NC)) > 0.3).astype(jnp.float32)

    mean, std = cnmp_forward(params, MIN_STD, contexts, targets, condition, ctx_mask)
    mean = jax.block_until_ready(mean)
    std = jax.block_until_ready(std)

    ref_mean, ref_std = ref_forward(params, MIN_STD, contexts, targets, condition, ctx_mask)

    assert mean.shape == (B, NT, OUTPUT_DIM) and std.shape == (B, NT, OUTPUT_DIM)
    # bf16 matmul operands (f32 accumulation) on the H x H layers -> loosened tolerance.
    assert jnp.allclose(mean, ref_mean, rtol=5e-2, atol=5e-2)
    assert jnp.allclose(std, ref_std, rtol=5e-2, atol=5e-2)
    assert bool(jnp.all(std > MIN_STD))

    print("KERNEL_OK")
</pallas_src>

<mosaic_0001>
module attributes {stable_mosaic.version = 11 : i64} {
  func.func @_cnmp_kernel(%arg0: i32, %arg1: memref<1x8x3xf32, #tpu.memory_space<vmem>>, %arg2: memref<1x8x1xf32, #tpu.memory_space<vmem>>, %arg3: memref<1x8x2xf32, #tpu.memory_space<vmem>>, %arg4: memref<1x1x1xf32, #tpu.memory_space<vmem>>, %arg5: memref<3x128xf32, #tpu.memory_space<vmem>>, %arg6: memref<1x128xf32, #tpu.memory_space<vmem>>, %arg7: memref<128x128xbf16, #tpu.memory_space<vmem>>, %arg8: memref<1x128xf32, #tpu.memory_space<vmem>>, %arg9: memref<128x128xbf16, #tpu.memory_space<vmem>>, %arg10: memref<1x128xf32, #tpu.memory_space<vmem>>, %arg11: memref<128x128xbf16, #tpu.memory_space<vmem>>, %arg12: memref<1x128xf32, #tpu.memory_space<vmem>>, %arg13: memref<128x128xbf16, #tpu.memory_space<vmem>>, %arg14: memref<2x128xf32, #tpu.memory_space<vmem>>, %arg15: memref<1x128xf32, #tpu.memory_space<vmem>>, %arg16: memref<1x128xf32, #tpu.memory_space<vmem>>, %arg17: memref<128x128xbf16, #tpu.memory_space<vmem>>, %arg18: memref<1x128xf32, #tpu.memory_space<vmem>>, %arg19: memref<128x128xbf16, #tpu.memory_space<vmem>>, %arg20: memref<1x128xf32, #tpu.memory_space<vmem>>, %arg21: memref<128x2xbf16, #tpu.memory_space<vmem>>, %arg22: memref<1x2xf32, #tpu.memory_space<vmem>>, %arg23: memref<8x2xf32, #tpu.memory_space<vmem>>) attributes {dimension_semantics = [#tpu.dimension_semantics<parallel>], iteration_bounds = array<i64: 2>, scalar_prefetch = 0 : i64, scratch_operands = 0 : i64, tpu.core_type = #tpu.core_type<tc>, window_params = [{transform_indices = @transform_0, window_bounds = array<i64: 1, 8, 3>}, {transform_indices = @transform_1, window_bounds = array<i64: 1, 8, 1>}, {transform_indices = @transform_2, window_bounds = array<i64: 1, 8, 2>}, {transform_indices = @transform_3, window_bounds = array<i64: 1, 1, 1>}, {pipeline_mode = #tpu.pipeline_mode<synchronous>, transform_indices = @transform_4, window_bounds = array<i64: 3, 128>}, {pipeline_mode = #tpu.pipeline_mode<synchronous>, transform_indices = @transform_5, window_bounds = array<i64: 1, 128>}, {pipeline_mode = #tpu.pipeline_mode<synchronous>, transform_indices = @transform_6, window_bounds = array<i64: 128, 128>}, {pipeline_mode = #tpu.pipeline_mode<synchronous>, transform_indices = @transform_7, window_bounds = array<i64: 1, 128>}, {pipeline_mode = #tpu.pipeline_mode<synchronous>, transform_indices = @transform_8, window_bounds = array<i64: 128, 128>}, {pipeline_mode = #tpu.pipeline_mode<synchronous>, transform_indices = @transform_9, window_bounds = array<i64: 1, 128>}, {pipeline_mode = #tpu.pipeline_mode<synchronous>, transform_indices = @transform_10, window_bounds = array<i64: 128, 128>}, {pipeline_mode = #tpu.pipeline_mode<synchronous>, transform_indices = @transform_11, window_bounds = array<i64: 1, 128>}, {pipeline_mode = #tpu.pipeline_mode<synchronous>, transform_indices = @transform_12, window_bounds = array<i64: 128, 128>}, {pipeline_mode = #tpu.pipeline_mode<synchronous>, transform_indices = @transform_13, window_bounds = array<i64: 2, 128>}, {pipeline_mode = #tpu.pipeline_mode<synchronous>, transform_indices = @transform_14, window_bounds = array<i64: 1, 128>}, {pipeline_mode = #tpu.pipeline_mode<synchronous>, transform_indices = @transform_15, window_bounds = array<i64: 1, 128>}, {pipeline_mode = #tpu.pipeline_mode<synchronous>, transform_indices = @transform_16, window_bounds = array<i64: 128, 128>}, {pipeline_mode = #tpu.pipeline_mode<synchronous>, transform_indices = @transform_17, window_bounds = array<i64: 1, 128>}, {pipeline_mode = #tpu.pipeline_mode<synchronous>, transform_indices = @transform_18, window_bounds = array<i64: 128, 128>}, {pipeline_mode = #tpu.pipeline_mode<synchronous>, transform_indices = @transform_19, window_bounds = array<i64: 1, 128>}, {pipeline_mode = #tpu.pipeline_mode<synchronous>, transform_indices = @transform_20, window_bounds = array<i64: 128, 2>}, {pipeline_mode = #tpu.pipeline_mode<synchronous>, transform_indices = @transform_21, window_bounds = array<i64: 1, 2>}, {transform_indices = @transform_22, window_bounds = array<i64: 8, 2>}]} {
    %c0 = arith.constant 0 : index
    %c0_0 = arith.constant 0 : index
    %c0_1 = arith.constant 0 : index
    %0 = vector.load %arg1[%c0, %c0_0, %c0_1] : memref<1x8x3xf32, #tpu.memory_space<vmem>>, vector<1x8x3xf32>
    %1 = vector.shape_cast %0 : vector<1x8x3xf32> to vector<8x3xf32>
    %c0_2 = arith.constant 0 : index
    %c0_3 = arith.constant 0 : index
    %2 = vector.load %arg5[%c0_2, %c0_3] : memref<3x128xf32, #tpu.memory_space<vmem>>, vector<3x128xf32>
    %3 = vector.shape_cast %1 : vector<8x3xf32> to vector<8x3x1xf32>
    %4 = vector.shape_cast %2 : vector<3x128xf32> to vector<1x3x128xf32>
    %5 = vector.broadcast %3 : vector<8x3x1xf32> to vector<8x3x128xf32>
    %6 = vector.broadcast %4 : vector<1x3x128xf32> to vector<8x3x128xf32>
    %7 = arith.mulf %5, %6 : vector<8x3x128xf32>
    %cst = arith.constant dense<0.000000e+00> : vector<8x128xf32>
    %8 = vector.multi_reduction <add>, %7, %cst [1] : vector<8x3x128xf32> to vector<8x128xf32>
    %c0_4 = arith.constant 0 : index
    %c0_5 = arith.constant 0 : index
    %9 = vector.load %arg6[%c0_4, %c0_5] : memref<1x128xf32, #tpu.memory_space<vmem>>, vector<1x128xf32>
    %10 = vector.broadcast %9 : vector<1x128xf32> to vector<8x128xf32>
    %11 = arith.addf %8, %10 : vector<8x128xf32>
    %cst_6 = arith.constant 0.000000e+00 : f32
    %12 = vector.broadcast %cst_6 : f32 to vector<8x128xf32>
    %13 = arith.maximumf %11, %12 : vector<8x128xf32>
    %14 = arith.truncf %13 : vector<8x128xf32> to vector<8x128xbf16>
    %c0_7 = arith.constant 0 : index
    %c0_8 = arith.constant 0 : index
    %15 = vector.load %arg7[%c0_7, %c0_8] : memref<128x128xbf16, #tpu.memory_space<vmem>>, vector<128x128xbf16>
    %cst_9 = arith.constant dense<0.000000e+00> : vector<8x128xf32>
    %16 = tpu.matmul %14, %15, %cst_9 {dimension_numbers = #tpu.dot_dimension_numbers<[1], [0], [0], [1], [0, 0, 1, 1], [], []>} : vector<8x128xbf16>, vector<128x128xbf16>, vector<8x128xf32> -> vector<8x128xf32>
    %c0_10 = arith.constant 0 : index
    %c0_11 = arith.constant 0 : index
    %17 = vector.load %arg8[%c0_10, %c0_11] : memref<1x128xf32, #tpu.memory_space<vmem>>, vector<1x128xf32>
    %18 = vector.broadcast %17 : vector<1x128xf32> to vector<8x128xf32>
    %19 = arith.addf %16, %18 : vector<8x128xf32>
    %cst_12 = arith.constant 0.000000e+00 : f32
    %20 = vector.broadcast %cst_12 : f32 to vector<8x128xf32>
    %21 = arith.maximumf %19, %20 : vector<8x128xf32>
    %22 = arith.truncf %21 : vector<8x128xf32> to vector<8x128xbf16>
    %c0_13 = arith.constant 0 : index
    %c0_14 = arith.constant 0 : index
    %23 = vector.load %arg9[%c0_13, %c0_14] : memref<128x128xbf16, #tpu.memory_space<vmem>>, vector<128x128xbf16>
    %cst_15 = arith.constant dense<0.000000e+00> : vector<8x128xf32>
    %24 = tpu.matmul %22, %23, %cst_15 {dimension_numbers = #tpu.dot_dimension_numbers<[1], [0], [0], [1], [0, 0, 1, 1], [], []>} : vector<8x128xbf16>, vector<128x128xbf16>, vector<8x128xf32> -> vector<8x128xf32>
    %c0_16 = arith.constant 0 : index
    %c0_17 = arith.constant 0 : index
    %25 = vector.load %arg10[%c0_16, %c0_17] : memref<1x128xf32, #tpu.memory_space<vmem>>, vector<1x128xf32>
    %26 = vector.broadcast %25 : vector<1x128xf32> to vector<8x128xf32>
    %27 = arith.addf %24, %26 : vector<8x128xf32>
    %cst_18 = arith.constant 0.000000e+00 : f32
    %28 = vector.broadcast %cst_18 : f32 to vector<8x128xf32>
    %29 = arith.maximumf %27, %28 : vector<8x128xf32>
    %30 = arith.truncf %29 : vector<8x128xf32> to vector<8x128xbf16>
    %c0_19 = arith.constant 0 : index
    %c0_20 = arith.constant 0 : index
    %31 = vector.load %arg11[%c0_19, %c0_20] : memref<128x128xbf16, #tpu.memory_space<vmem>>, vector<128x128xbf16>
    %cst_21 = arith.constant dense<0.000000e+00> : vector<8x128xf32>
    %32 = tpu.matmul %30, %31, %cst_21 {dimension_numbers = #tpu.dot_dimension_numbers<[1], [0], [0], [1], [0, 0, 1, 1], [], []>} : vector<8x128xbf16>, vector<128x128xbf16>, vector<8x128xf32> -> vector<8x128xf32>
    %c0_22 = arith.constant 0 : index
    %c0_23 = arith.constant 0 : index
    %33 = vector.load %arg12[%c0_22, %c0_23] : memref<1x128xf32, #tpu.memory_space<vmem>>, vector<1x128xf32>
    %34 = vector.broadcast %33 : vector<1x128xf32> to vector<8x128xf32>
    %35 = arith.addf %32, %34 : vector<8x128xf32>
    %36 = vector.shape_cast %35 : vector<8x128xf32> to vector<1x8x128xf32>
    %c0_24 = arith.constant 0 : index
    %c0_25 = arith.constant 0 : index
    %c0_26 = arith.constant 0 : index
    %37 = vector.load %arg2[%c0_24, %c0_25, %c0_26] : memref<1x8x1xf32, #tpu.memory_space<vmem>>, vector<1x8x1xf32>
    %38 = vector.broadcast %37 : vector<1x8x1xf32> to vector<1x8x128xf32>
    %39 = arith.mulf %36, %38 : vector<1x8x128xf32>
    %cst_27 = arith.constant dense<0.000000e+00> : vector<1x128xf32>
    %40 = vector.multi_reduction <add>, %39, %cst_27 [1] : vector<1x8x128xf32> to vector<1x128xf32>
    %41 = arith.truncf %40 : vector<1x128xf32> to vector<1x128xbf16>
    %c0_28 = arith.constant 0 : index
    %c0_29 = arith.constant 0 : index
    %42 = vector.load %arg13[%c0_28, %c0_29] : memref<128x128xbf16, #tpu.memory_space<vmem>>, vector<128x128xbf16>
    %cst_30 = arith.constant dense<0.000000e+00> : vector<1x128xf32>
    %43 = tpu.matmul %41, %42, %cst_30 {dimension_numbers = #tpu.dot_dimension_numbers<[1], [0], [0], [1], [0, 0, 1, 1], [], []>} : vector<1x128xbf16>, vector<128x128xbf16>, vector<1x128xf32> -> vector<1x128xf32>
    %c0_31 = arith.constant 0 : index
    %c0_32 = arith.constant 0 : index
    %c0_33 = arith.constant 0 : index
    %44 = vector.load %arg4[%c0_31, %c0_32, %c0_33] : memref<1x1x1xf32, #tpu.memory_space<vmem>>, vector<1x1x1xf32>
    %45 = vector.shape_cast %44 : vector<1x1x1xf32> to vector<1x1xf32>
    %c0_34 = arith.constant 0 : index
    %c0_35 = arith.constant 0 : index
    %46 = vector.load %arg16[%c0_34, %c0_35] : memref<1x128xf32, #tpu.memory_space<vmem>>, vector<1x128xf32>
    %47 = arith.addf %43, %46 : vector<1x128xf32>
    %c0_36 = arith.constant 0 : index
    %c0_37 = arith.constant 0 : index
    %48 = vector.load %arg15[%c0_36, %c0_37] : memref<1x128xf32, #tpu.memory_space<vmem>>, vector<1x128xf32>
    %49 = vector.shape_cast %45 : vector<1x1xf32> to vector<1x1x1xf32>
    %50 = vector.shape_cast %48 : vector<1x128xf32> to vector<1x1x128xf32>
    %51 = vector.broadcast %49 : vector<1x1x1xf32> to vector<1x1x128xf32>
    %52 = arith.mulf %51, %50 : vector<1x1x128xf32>
    %cst_38 = arith.constant dense<0.000000e+00> : vector<1x128xf32>
    %53 = vector.multi_reduction <add>, %52, %cst_38 [1] : vector<1x1x128xf32> to vector<1x128xf32>
    %54 = arith.addf %47, %53 : vector<1x128xf32>
    %c0_39 = arith.constant 0 : index
    %c0_40 = arith.constant 0 : index
    %c0_41 = arith.constant 0 : index
    %55 = vector.load %arg3[%c0_39, %c0_40, %c0_41] : memref<1x8x2xf32, #tpu.memory_space<vmem>>, vector<1x8x2xf32>
    %56 = vector.shape_cast %55 : vector<1x8x2xf32> to vector<8x2xf32>
    %c0_42 = arith.constant 0 : index
    %c0_43 = arith.constant 0 : index
    %57 = vector.load %arg14[%c0_42, %c0_43] : memref<2x128xf32, #tpu.memory_space<vmem>>, vector<2x128xf32>
    %58 = vector.shape_cast %56 : vector<8x2xf32> to vector<8x2x1xf32>
    %59 = vector.shape_cast %57 : vector<2x128xf32> to vector<1x2x128xf32>
    %60 = vector.broadcast %58 : vector<8x2x1xf32> to vector<8x2x128xf32>
    %61 = vector.broadcast %59 : vector<1x2x128xf32> to vector<8x2x128xf32>
    %62 = arith.mulf %60, %61 : vector<8x2x128xf32>
    %cst_44 = arith.constant dense<0.000000e+00> : vector<8x128xf32>
    %63 = vector.multi_reduction <add>, %62, %cst_44 [1] : vector<8x2x128xf32> to vector<8x128xf32>
    %64 = vector.shape_cast %63 : vector<8x128xf32> to vector<1x8x128xf32>
    %65 = vector.shape_cast %54 : vector<1x128xf32> to vector<1x1x128xf32>
    %66 = vector.broadcast %65 : vector<1x1x128xf32> to vector<1x8x128xf32>
    %67 = arith.addf %64, %66 : vector<1x8x128xf32>
    %cst_45 = arith.constant 0.000000e+00 : f32
    %68 = vector.broadcast %cst_45 : f32 to vector<1x8x128xf32>
    %69 = arith.maximumf %67, %68 : vector<1x8x128xf32>
    %70 = vector.shape_cast %69 : vector<1x8x128xf32> to vector<8x128xf32>
    %71 = arith.truncf %70 : vector<8x128xf32> to vector<8x128xbf16>
    %c0_46 = arith.constant 0 : index
    %c0_47 = arith.constant 0 : index
    %72 = vector.load %arg17[%c0_46, %c0_47] : memref<128x128xbf16, #tpu.memory_space<vmem>>, vector<128x128xbf16>
    %cst_48 = arith.constant dense<0.000000e+00> : vector<8x128xf32>
    %73 = tpu.matmul %71, %72, %cst_48 {dimension_numbers = #tpu.dot_dimension_numbers<[1], [0], [0], [1], [0, 0, 1, 1], [], []>} : vector<8x128xbf16>, vector<128x128xbf16>, vector<8x128xf32> -> vector<8x128xf32>
    %c0_49 = arith.constant 0 : index
    %c0_50 = arith.constant 0 : index
    %74 = vector.load %arg18[%c0_49, %c0_50] : memref<1x128xf32, #tpu.memory_space<vmem>>, vector<1x128xf32>
    %75 = vector.broadcast %74 : vector<1x128xf32> to vector<8x128xf32>
    %76 = arith.addf %73, %75 : vector<8x128xf32>
    %cst_51 = arith.constant 0.000000e+00 : f32
    %77 = vector.broadcast %cst_51 : f32 to vector<8x128xf32>
    %78 = arith.maximumf %76, %77 : vector<8x128xf32>
    %79 = arith.truncf %78 : vector<8x128xf32> to vector<8x128xbf16>
    %c0_52 = arith.constant 0 : index
    %c0_53 = arith.constant 0 : index
    %80 = vector.load %arg19[%c0_52, %c0_53] : memref<128x128xbf16, #tpu.memory_space<vmem>>, vector<128x128xbf16>
    %cst_54 = arith.constant dense<0.000000e+00> : vector<8x128xf32>
    %81 = tpu.matmul %79, %80, %cst_54 {dimension_numbers = #tpu.dot_dimension_numbers<[1], [0], [0], [1], [0, 0, 1, 1], [], []>} : vector<8x128xbf16>, vector<128x128xbf16>, vector<8x128xf32> -> vector<8x128xf32>
    %c0_55 = arith.constant 0 : index
    %c0_56 = arith.constant 0 : index
    %82 = vector.load %arg20[%c0_55, %c0_56] : memref<1x128xf32, #tpu.memory_space<vmem>>, vector<1x128xf32>
    %83 = vector.broadcast %82 : vector<1x128xf32> to vector<8x128xf32>
    %84 = arith.addf %81, %83 : vector<8x128xf32>
    %cst_57 = arith.constant 0.000000e+00 : f32
    %85 = vector.broadcast %cst_57 : f32 to vector<8x128xf32>
    %86 = arith.maximumf %84, %85 : vector<8x128xf32>
    %87 = arith.truncf %86 : vector<8x128xf32> to vector<8x128xbf16>
    %c0_58 = arith.constant 0 : index
    %c0_59 = arith.constant 0 : index
    %88 = vector.load %arg21[%c0_58, %c0_59] : memref<128x2xbf16, #tpu.memory_space<vmem>>, vector<128x2xbf16>
    %cst_60 = arith.constant dense<0.000000e+00> : vector<8x2xf32>
    %89 = tpu.matmul %87, %88, %cst_60 {dimension_numbers = #tpu.dot_dimension_numbers<[1], [0], [0], [1], [0, 0, 1, 1], [], []>} : vector<8x128xbf16>, vector<128x2xbf16>, vector<8x2xf32> -> vector<8x2xf32>
    %c0_61 = arith.constant 0 : index
    %c0_62 = arith.constant 0 : index
    %90 = vector.load %arg22[%c0_61, %c0_62] : memref<1x2xf32, #tpu.memory_space<vmem>>, vector<1x2xf32>
    %91 = vector.broadcast %90 : vector<1x2xf32> to vector<8x2xf32>
    %92 = arith.addf %89, %91 : vector<8x2xf32>
    %cst_63 = arith.constant 0.000000e+00 : f32
    %93 = vector.broadcast %cst_63 : f32 to vector<8x2xf32>
    %94 = arith.maximumf %92, %93 : vector<8x2xf32>
    %95 = math.absf %92 : vector<8x2xf32>
    %cst_64 = arith.constant 0.000000e+00 : f32
    %96 = vector.broadcast %cst_64 : f32 to vector<8x2xf32>
    %97 = arith.subf %96, %95 : vector<8x2xf32>
    %98 = math.exp %97 : vector<8x2xf32>
    %99 = math.log1p %98 : vector<8x2xf32>
    %100 = arith.addf %94, %99 : vector<8x2xf32>
    %cst_65 = arith.constant 1.000000e-01 : f32
    %101 = vector.broadcast %cst_65 : f32 to vector<8x2xf32>
    %102 = arith.addf %100, %101 : vector<8x2xf32>
    %103 = tpu.iota {dimensions = array<i32: 1>} : vector<8x2xi32>
    %c1_i32 = arith.constant 1 : i32
    %104 = vector.broadcast %c1_i32 : i32 to vector<8x2xi32>
    %105 = arith.cmpi slt, %103, %104 : vector<8x2xi32>
    %106 = arith.select %105, %92, %102 : vector<8x2xi1>, vector<8x2xf32>
    %c0_66 = arith.constant 0 : index
    %c0_67 = arith.constant 0 : index
    %107 = vector.load %arg23[%c0_66, %c0_67] : memref<8x2xf32, #tpu.memory_space<vmem>>, vector<8x2xf32>
    tpu.vector_store %arg23[%c0_66, %c0_67], %106 {strides = array<i32>} : memref<8x2xf32, #tpu.memory_space<vmem>>, vector<8x2xf32>,
    return
  }
  func.func @transform_0(%arg0: i32) -> (i32, i32, i32) {
    %c0_i32 = arith.constant 0 : i32
    %c0_i32_0 = arith.constant 0 : i32
    %c0_i32_1 = arith.constant 0 : i32
    return %arg0, %c0_i32, %c0_i32_0 : i32, i32, i32
  }
  func.func @transform_1(%arg0: i32) -> (i32, i32, i32) {
    %c0_i32 = arith.constant 0 : i32
    %c0_i32_0 = arith.constant 0 : i32
    %c0_i32_1 = arith.constant 0 : i32
    return %arg0, %c0_i32, %c0_i32_0 : i32, i32, i32
  }
  func.func @transform_2(%arg0: i32) -> (i32, i32, i32) {
    %c0_i32 = arith.constant 0 : i32
    %c0_i32_0 = arith.constant 0 : i32
    %c0_i32_1 = arith.constant 0 : i32
    return %arg0, %c0_i32, %c0_i32_0 : i32, i32, i32
  }
  func.func @transform_3(%arg0: i32) -> (i32, i32, i32) {
    %c0_i32 = arith.constant 0 : i32
    %c0_i32_0 = arith.constant 0 : i32
    %c0_i32_1 = arith.constant 0 : i32
    return %arg0, %c0_i32, %c0_i32_0 : i32, i32, i32
  }
  func.func @transform_4(%arg0: i32) -> (i32, i32) {
    %c0_i32 = arith.constant 0 : i32
    %c0_i32_0 = arith.constant 0 : i32
    %c0_i32_1 = arith.constant 0 : i32
    return %c0_i32, %c0_i32_0 : i32, i32
  }
  func.func @transform_5(%arg0: i32) -> (i32, i32) {
    %c0_i32 = arith.constant 0 : i32
    %c0_i32_0 = arith.constant 0 : i32
    %c0_i32_1 = arith.constant 0 : i32
    return %c0_i32, %c0_i32_0 : i32, i32
  }
  func.func @transform_6(%arg0: i32) -> (i32, i32) {
    %c0_i32 = arith.constant 0 : i32
    %c0_i32_0 = arith.constant 0 : i32
    %c0_i32_1 = arith.constant 0 : i32
    return %c0_i32, %c0_i32_0 : i32, i32
  }
  func.func @transform_7(%arg0: i32) -> (i32, i32) {
    %c0_i32 = arith.constant 0 : i32
    %c0_i32_0 = arith.constant 0 : i32
    %c0_i32_1 = arith.constant 0 : i32
    return %c0_i32, %c0_i32_0 : i32, i32
  }
  func.func @transform_8(%arg0: i32) -> (i32, i32) {
    %c0_i32 = arith.constant 0 : i32
    %c0_i32_0 = arith.constant 0 : i32
    %c0_i32_1 = arith.constant 0 : i32
    return %c0_i32, %c0_i32_0 : i32, i32
  }
  func.func @transform_9(%arg0: i32) -> (i32, i32) {
    %c0_i32 = arith.constant 0 : i32
    %c0_i32_0 = arith.constant 0 : i32
    %c0_i32_1 = arith.constant 0 : i32
    return %c0_i32, %c0_i32_0 : i32, i32
  }
  func.func @transform_10(%arg0: i32) -> (i32, i32) {
    %c0_i32 = arith.constant 0 : i32
    %c0_i32_0 = arith.constant 0 : i32
    %c0_i32_1 = arith.constant 0 : i32
    return %c0_i32, %c0_i32_0 : i32, i32
  }
  func.func @transform_11(%arg0: i32) -> (i32, i32) {
    %c0_i32 = arith.constant 0 : i32
    %c0_i32_0 = arith.constant 0 : i32
    %c0_i32_1 = arith.constant 0 : i32
    return %c0_i32, %c0_i32_0 : i32, i32
  }
  func.func @transform_12(%arg0: i32) -> (i32, i32) {
    %c0_i32 = arith.constant 0 : i32
    %c0_i32_0 = arith.constant 0 : i32
    %c0_i32_1 = arith.constant 0 : i32
    return %c0_i32, %c0_i32_0 : i32, i32
  }
  func.func @transform_13(%arg0: i32) -> (i32, i32) {
    %c0_i32 = arith.constant 0 : i32
    %c0_i32_0 = arith.constant 0 : i32
    %c0_i32_1 = arith.constant 0 : i32
    return %c0_i32, %c0_i32_0 : i32, i32
  }
  func.func @transform_14(%arg0: i32) -> (i32, i32) {
    %c0_i32 = arith.constant 0 : i32
    %c0_i32_0 = arith.constant 0 : i32
    %c0_i32_1 = arith.constant 0 : i32
    return %c0_i32, %c0_i32_0 : i32, i32
  }
  func.func @transform_15(%arg0: i32) -> (i32, i32) {
    %c0_i32 = arith.constant 0 : i32
    %c0_i32_0 = arith.constant 0 : i32
    %c0_i32_1 = arith.constant 0 : i32
    return %c0_i32, %c0_i32_0 : i32, i32
  }
  func.func @transform_16(%arg0: i32) -> (i32, i32) {
    %c0_i32 = arith.constant 0 : i32
    %c0_i32_0 = arith.constant 0 : i32
    %c0_i32_1 = arith.constant 0 : i32
    return %c0_i32, %c0_i32_0 : i32, i32
  }
  func.func @transform_17(%arg0: i32) -> (i32, i32) {
    %c0_i32 = arith.constant 0 : i32
    %c0_i32_0 = arith.constant 0 : i32
    %c0_i32_1 = arith.constant 0 : i32
    return %c0_i32, %c0_i32_0 : i32, i32
  }
  func.func @transform_18(%arg0: i32) -> (i32, i32) {
    %c0_i32 = arith.constant 0 : i32
    %c0_i32_0 = arith.constant 0 : i32
    %c0_i32_1 = arith.constant 0 : i32
    return %c0_i32, %c0_i32_0 : i32, i32
  }
  func.func @transform_19(%arg0: i32) -> (i32, i32) {
    %c0_i32 = arith.constant 0 : i32
    %c0_i32_0 = arith.constant 0 : i32
    %c0_i32_1 = arith.constant 0 : i32
    return %c0_i32, %c0_i32_0 : i32, i32
  }
  func.func @transform_20(%arg0: i32) -> (i32, i32) {
    %c0_i32 = arith.constant 0 : i32
    %c0_i32_0 = arith.constant 0 : i32
    %c0_i32_1 = arith.constant 0 : i32
    return %c0_i32, %c0_i32_0 : i32, i32
  }
  func.func @transform_21(%arg0: i32) -> (i32, i32) {
    %c0_i32 = arith.constant 0 : i32
    %c0_i32_0 = arith.constant 0 : i32
    %c0_i32_1 = arith.constant 0 : i32
    return %c0_i32, %c0_i32_0 : i32, i32
  }
  func.func @transform_22(%arg0: i32) -> (i32, i32) {
    %c0_i32 = arith.constant 0 : i32
    %c0_i32_0 = arith.constant 0 : i32
    return %arg0, %c0_i32 : i32, i32
  }
}

module attributes {stable_mosaic.version = 11 : i64} {
  func.func @_cnmp_kernel(%arg0: i32, %arg1: memref<1x8x3xf32, #tpu.memory_space<vmem>>, %arg2: memref<1x8x1xf32, #tpu.memory_space<vmem>>, %arg3: memref<1x8x2xf32, #tpu.memory_space<vmem>>, %arg4: memref<1x1x1xf32, #tpu.memory_space<vmem>>, %arg5: memref<3x128xf32, #tpu.memory_space<vmem>>, %arg6: memref<1x128xf32, #tpu.memory_space<vmem>>, %arg7: memref<128x128xbf16, #tpu.memory_space<vmem>>, %arg8: memref<1x128xf32, #tpu.memory_space<vmem>>, %arg9: memref<128x128xbf16, #tpu.memory_space<vmem>>, %arg10: memref<1x128xf32, #tpu.memory_space<vmem>>, %arg11: memref<128x128xbf16, #tpu.memory_space<vmem>>, %arg12: memref<1x128xf32, #tpu.memory_space<vmem>>, %arg13: memref<128x128xbf16, #tpu.memory_space<vmem>>, %arg14: memref<2x128xf32, #tpu.memory_space<vmem>>, %arg15: memref<1x128xf32, #tpu.memory_space<vmem>>, %arg16: memref<1x128xf32, #tpu.memory_space<vmem>>, %arg17: memref<128x128xbf16, #tpu.memory_space<vmem>>, %arg18: memref<1x128xf32, #tpu.memory_space<vmem>>, %arg19: memref<128x128xbf16, #tpu.memory_space<vmem>>, %arg20: memref<1x128xf32, #tpu.memory_space<vmem>>, %arg21: memref<128x2xbf16, #tpu.memory_space<vmem>>, %arg22: memref<1x2xf32, #tpu.memory_space<vmem>>, %arg23: memref<8x2xf32, #tpu.memory_space<vmem>>) attributes {dimension_semantics = [#tpu.dimension_semantics<parallel>], iteration_bounds = array<i64: 2>, scalar_prefetch = 0 : i64, scratch_operands = 0 : i64, tpu.core_type = #tpu.core_type<tc>, window_params = [{transform_indices = @transform_0, window_bounds = array<i64: 1, 8, 3>}, {transform_indices = @transform_1, window_bounds = array<i64: 1, 8, 1>}, {transform_indices = @transform_2, window_bounds = array<i64: 1, 8, 2>}, {transform_indices = @transform_3, window_bounds = array<i64: 1, 1, 1>}, {pipeline_mode = #tpu.pipeline_mode<synchronous>, transform_indices = @transform_4, window_bounds = array<i64: 3, 128>}, {pipeline_mode = #tpu.pipeline_mode<synchronous>, transform_indices = @transform_5, window_bounds = array<i64: 1, 128>}, {pipeline_mode = #tpu.pipeline_mode<synchronous>, transform_indices = @transform_6, window_bounds = array<i64: 128, 128>}, {pipeline_mode = #tpu.pipeline_mode<synchronous>, transform_indices = @transform_7, window_bounds = array<i64: 1, 128>}, {pipeline_mode = #tpu.pipeline_mode<synchronous>, transform_indices = @transform_8, window_bounds = array<i64: 128, 128>}, {pipeline_mode = #tpu.pipeline_mode<synchronous>, transform_indices = @transform_9, window_bounds = array<i64: 1, 128>}, {pipeline_mode = #tpu.pipeline_mode<synchronous>, transform_indices = @transform_10, window_bounds = array<i64: 128, 128>}, {pipeline_mode = #tpu.pipeline_mode<synchronous>, transform_indices = @transform_11, window_bounds = array<i64: 1, 128>}, {pipeline_mode = #tpu.pipeline_mode<synchronous>, transform_indices = @transform_12, window_bounds = array<i64: 128, 128>}, {pipeline_mode = #tpu.pipeline_mode<synchronous>, transform_indices = @transform_13, window_bounds = array<i64: 2, 128>}, {pipeline_mode = #tpu.pipeline_mode<synchronous>, transform_indices = @transform_14, window_bounds = array<i64: 1, 128>}, {pipeline_mode = #tpu.pipeline_mode<synchronous>, transform_indices = @transform_15, window_bounds = array<i64: 1, 128>}, {pipeline_mode = #tpu.pipeline_mode<synchronous>, transform_indices = @transform_16, window_bounds = array<i64: 128, 128>}, {pipeline_mode = #tpu.pipeline_mode<synchronous>, transform_indices = @transform_17, window_bounds = array<i64: 1, 128>}, {pipeline_mode = #tpu.pipeline_mode<synchronous>, transform_indices = @transform_18, window_bounds = array<i64: 128, 128>}, {pipeline_mode = #tpu.pipeline_mode<synchronous>, transform_indices = @transform_19, window_bounds = array<i64: 1, 128>}, {pipeline_mode = #tpu.pipeline_mode<synchronous>, transform_indices = @transform_20, window_bounds = array<i64: 128, 2>}, {pipeline_mode = #tpu.pipeline_mode<synchronous>, transform_indices = @transform_21, window_bounds = array<i64: 1, 2>}, {transform_indices = @transform_22, window_bounds = array<i64: 8, 2>}]} {
    %c0 = arith.constant 0 : index
    %c0_0 = arith.constant 0 : index
    %c0_1 = arith.constant 0 : index
    %0 = vector.load %arg1[%c0, %c0_0, %c0_1] : memref<1x8x3xf32, #tpu.memory_space<vmem>>, vector<1x8x3xf32>
    %1 = vector.shape_cast %0 : vector<1x8x3xf32> to vector<8x3xf32>
    %c0_2 = arith.constant 0 : index
    %c0_3 = arith.constant 0 : index
    %2 = vector.load %arg5[%c0_2, %c0_3] : memref<3x128xf32, #tpu.memory_space<vmem>>, vector<3x128xf32>
    %3 = vector.shape_cast %1 : vector<8x3xf32> to vector<8x3x1xf32>
    %4 = vector.shape_cast %2 : vector<3x128xf32> to vector<1x3x128xf32>
    %5 = vector.broadcast %3 : vector<8x3x1xf32> to vector<8x3x128xf32>
    %6 = vector.broadcast %4 : vector<1x3x128xf32> to vector<8x3x128xf32>
    %7 = arith.mulf %5, %6 : vector<8x3x128xf32>
    %cst = arith.constant dense<0.000000e+00> : vector<8x128xf32>
    %8 = vector.multi_reduction <add>, %7, %cst [1] : vector<8x3x128xf32> to vector<8x128xf32>
    %c0_4 = arith.constant 0 : index
    %c0_5 = arith.constant 0 : index
    %9 = vector.load %arg6[%c0_4, %c0_5] : memref<1x128xf32, #tpu.memory_space<vmem>>, vector<1x128xf32>
    %10 = vector.broadcast %9 : vector<1x128xf32> to vector<8x128xf32>
    %11 = arith.addf %8, %10 : vector<8x128xf32>
    %cst_6 = arith.constant 0.000000e+00 : f32
    %12 = vector.broadcast %cst_6 : f32 to vector<8x128xf32>
    %13 = arith.maximumf %11, %12 : vector<8x128xf32>
    %14 = arith.truncf %13 : vector<8x128xf32> to vector<8x128xbf16>
    %c0_7 = arith.constant 0 : index
    %c0_8 = arith.constant 0 : index
    %15 = vector.load %arg7[%c0_7, %c0_8] : memref<128x128xbf16, #tpu.memory_space<vmem>>, vector<128x128xbf16>
    %cst_9 = arith.constant dense<0.000000e+00> : vector<8x128xf32>
    %16 = tpu.matmul %14, %15, %cst_9 {dimension_numbers = #tpu.dot_dimension_numbers<[1], [0], [0], [1], [0, 0, 1, 1], [], []>} : vector<8x128xbf16>, vector<128x128xbf16>, vector<8x128xf32> -> vector<8x128xf32>
    %c0_10 = arith.constant 0 : index
    %c0_11 = arith.constant 0 : index
    %17 = vector.load %arg8[%c0_10, %c0_11] : memref<1x128xf32, #tpu.memory_space<vmem>>, vector<1x128xf32>
    %18 = vector.broadcast %17 : vector<1x128xf32> to vector<8x128xf32>
    %19 = arith.addf %16, %18 : vector<8x128xf32>
    %cst_12 = arith.constant 0.000000e+00 : f32
    %20 = vector.broadcast %cst_12 : f32 to vector<8x128xf32>
    %21 = arith.maximumf %19, %20 : vector<8x128xf32>
    %22 = arith.truncf %21 : vector<8x128xf32> to vector<8x128xbf16>
    %c0_13 = arith.constant 0 : index
    %c0_14 = arith.constant 0 : index
    %23 = vector.load %arg9[%c0_13, %c0_14] : memref<128x128xbf16, #tpu.memory_space<vmem>>, vector<128x128xbf16>
    %cst_15 = arith.constant dense<0.000000e+00> : vector<8x128xf32>
    %24 = tpu.matmul %22, %23, %cst_15 {dimension_numbers = #tpu.dot_dimension_numbers<[1], [0], [0], [1], [0, 0, 1, 1], [], []>} : vector<8x128xbf16>, vector<128x128xbf16>, vector<8x128xf32> -> vector<8x128xf32>
    %c0_16 = arith.constant 0 : index
    %c0_17 = arith.constant 0 : index
    %25 = vector.load %arg10[%c0_16, %c0_17] : memref<1x128xf32, #tpu.memory_space<vmem>>, vector<1x128xf32>
    %26 = vector.broadcast %25 : vector<1x128xf32> to vector<8x128xf32>
    %27 = arith.addf %24, %26 : vector<8x128xf32>
    %cst_18 = arith.constant 0.000000e+00 : f32
    %28 = vector.broadcast %cst_18 : f32 to vector<8x128xf32>
    %29 = arith.maximumf %27, %28 : vector<8x128xf32>
    %30 = arith.truncf %29 : vector<8x128xf32> to vector<8x128xbf16>
    %c0_19 = arith.constant 0 : index
    %c0_20 = arith.constant 0 : index
    %31 = vector.load %arg11[%c0_19, %c0_20] : memref<128x128xbf16, #tpu.memory_space<vmem>>, vector<128x128xbf16>
    %cst_21 = arith.constant dense<0.000000e+00> : vector<8x128xf32>
    %32 = tpu.matmul %30, %31, %cst_21 {dimension_numbers = #tpu.dot_dimension_numbers<[1], [0], [0], [1], [0, 0, 1, 1], [], []>} : vector<8x128xbf16>, vector<128x128xbf16>, vector<8x128xf32> -> vector<8x128xf32>
    %c0_22 = arith.constant 0 : index
    %c0_23 = arith.constant 0 : index
    %33 = vector.load %arg12[%c0_22, %c0_23] : memref<1x128xf32, #tpu.memory_space<vmem>>, vector<1x128xf32>
    %34 = vector.broadcast %33 : vector<1x128xf32> to vector<8x128xf32>
    %35 = arith.addf %32, %34 : vector<8x128xf32>
    %36 = vector.shape_cast %35 : vector<8x128xf32> to vector<1x8x128xf32>
    %c0_24 = arith.constant 0 : index
    %c0_25 = arith.constant 0 : index
    %c0_26 = arith.constant 0 : index
    %37 = vector.load %arg2[%c0_24, %c0_25, %c0_26] : memref<1x8x1xf32, #tpu.memory_space<vmem>>, vector<1x8x1xf32>
    %38 = vector.broadcast %37 : vector<1x8x1xf32> to vector<1x8x128xf32>
    %39 = arith.mulf %36, %38 : vector<1x8x128xf32>
    %cst_27 = arith.constant dense<0.000000e+00> : vector<1x128xf32>
    %40 = vector.multi_reduction <add>, %39, %cst_27 [1] : vector<1x8x128xf32> to vector<1x128xf32>
    %41 = arith.truncf %40 : vector<1x128xf32> to vector<1x128xbf16>
    %c0_28 = arith.constant 0 : index
    %c0_29 = arith.constant 0 : index
    %42 = vector.load %arg13[%c0_28, %c0_29] : memref<128x128xbf16, #tpu.memory_space<vmem>>, vector<128x128xbf16>
    %cst_30 = arith.constant dense<0.000000e+00> : vector<1x128xf32>
    %43 = tpu.matmul %41, %42, %cst_30 {dimension_numbers = #tpu.dot_dimension_numbers<[1], [0], [0], [1], [0, 0, 1, 1], [], []>} : vector<1x128xbf16>, vector<128x128xbf16>, vector<1x128xf32> -> vector<1x128xf32>
    %c0_31 = arith.constant 0 : index
    %c0_32 = arith.constant 0 : index
    %c0_33 = arith.constant 0 : index
    %44 = vector.load %arg4[%c0_31, %c0_32, %c0_33] : memref<1x1x1xf32, #tpu.memory_space<vmem>>, vector<1x1x1xf32>
    %45 = vector.shape_cast %44 : vector<1x1x1xf32> to vector<1x1xf32>
    %c0_34 = arith.constant 0 : index
    %c0_35 = arith.constant 0 : index
    %46 = vector.load %arg16[%c0_34, %c0_35] : memref<1x128xf32, #tpu.memory_space<vmem>>, vector<1x128xf32>
    %47 = arith.addf %43, %46 : vector<1x128xf32>
    %c0_36 = arith.constant 0 : index
    %c0_37 = arith.constant 0 : index
    %48 = vector.load %arg15[%c0_36, %c0_37] : memref<1x128xf32, #tpu.memory_space<vmem>>, vector<1x128xf32>
    %49 = vector.shape_cast %45 : vector<1x1xf32> to vector<1x1x1xf32>
    %50 = vector.shape_cast %48 : vector<1x128xf32> to vector<1x1x128xf32>
    %51 = vector.broadcast %49 : vector<1x1x1xf32> to vector<1x1x128xf32>
    %52 = arith.mulf %51, %50 : vector<1x1x128xf32>
    %cst_38 = arith.constant dense<0.000000e+00> : vector<1x128xf32>
    %53 = vector.multi_reduction <add>, %52, %cst_38 [1] : vector<1x1x128xf32> to vector<1x128xf32>
    %54 = arith.addf %47, %53 : vector<1x128xf32>
    %c0_39 = arith.constant 0 : index
    %c0_40 = arith.constant 0 : index
    %c0_41 = arith.constant 0 : index
    %55 = vector.load %arg3[%c0_39, %c0_40, %c0_41] : memref<1x8x2xf32, #tpu.memory_space<vmem>>, vector<1x8x2xf32>
    %56 = vector.shape_cast %55 : vector<1x8x2xf32> to vector<8x2xf32>
    %c0_42 = arith.constant 0 : index
    %c0_43 = arith.constant 0 : index
    %57 = vector.load %arg14[%c0_42, %c0_43] : memref<2x128xf32, #tpu.memory_space<vmem>>, vector<2x128xf32>
    %58 = vector.shape_cast %56 : vector<8x2xf32> to vector<8x2x1xf32>
    %59 = vector.shape_cast %57 : vector<2x128xf32> to vector<1x2x128xf32>
    %60 = vector.broadcast %58 : vector<8x2x1xf32> to vector<8x2x128xf32>
    %61 = vector.broadcast %59 : vector<1x2x128xf32> to vector<8x2x128xf32>
    %62 = arith.mulf %60, %61 : vector<8x2x128xf32>
    %cst_44 = arith.constant dense<0.000000e+00> : vector<8x128xf32>
    %63 = vector.multi_reduction <add>, %62, %cst_44 [1] : vector<8x2x128xf32> to vector<8x128xf32>
    %64 = vector.shape_cast %63 : vector<8x128xf32> to vector<1x8x128xf32>
    %65 = vector.shape_cast %54 : vector<1x128xf32> to vector<1x1x128xf32>
    %66 = vector.broadcast %65 : vector<1x1x128xf32> to vector<1x8x128xf32>
    %67 = arith.addf %64, %66 : vector<1x8x128xf32>
    %cst_45 = arith.constant 0.000000e+00 : f32
    %68 = vector.broadcast %cst_45 : f32 to vector<1x8x128xf32>
    %69 = arith.maximumf %67, %68 : vector<1x8x128xf32>
    %70 = vector.shape_cast %69 : vector<1x8x128xf32> to vector<8x128xf32>
    %71 = arith.truncf %70 : vector<8x128xf32> to vector<8x128xbf16>
    %c0_46 = arith.constant 0 : index
    %c0_47 = arith.constant 0 : index
    %72 = vector.load %arg17[%c0_46, %c0_47] : memref<128x128xbf16, #tpu.memory_space<vmem>>, vector<128x128xbf16>
    %cst_48 = arith.constant dense<0.000000e+00> : vector<8x128xf32>
    %73 = tpu.matmul %71, %72, %cst_48 {dimension_numbers = #tpu.dot_dimension_numbers<[1], [0], [0], [1], [0, 0, 1, 1], [], []>} : vector<8x128xbf16>, vector<128x128xbf16>, vector<8x128xf32> -> vector<8x128xf32>
    %c0_49 = arith.constant 0 : index
    %c0_50 = arith.constant 0 : index
    %74 = vector.load %arg18[%c0_49, %c0_50] : memref<1x128xf32, #tpu.memory_space<vmem>>, vector<1x128xf32>
    %75 = vector.broadcast %74 : vector<1x128xf32> to vector<8x128xf32>
    %76 = arith.addf %73, %75 : vector<8x128xf32>
    %cst_51 = arith.constant 0.000000e+00 : f32
    %77 = vector.broadcast %cst_51 : f32 to vector<8x128xf32>
    %78 = arith.maximumf %76, %77 : vector<8x128xf32>
    %79 = arith.truncf %78 : vector<8x128xf32> to vector<8x128xbf16>
    %c0_52 = arith.constant 0 : index
    %c0_53 = arith.constant 0 : index
    %80 = vector.load %arg19[%c0_52, %c0_53] : memref<128x128xbf16, #tpu.memory_space<vmem>>, vector<128x128xbf16>
    %cst_54 = arith.constant dense<0.000000e+00> : vector<8x128xf32>
    %81 = tpu.matmul %79, %80, %cst_54 {dimension_numbers = #tpu.dot_dimension_numbers<[1], [0], [0], [1], [0, 0, 1, 1], [], []>} : vector<8x128xbf16>, vector<128x128xbf16>, vector<8x128xf32> -> vector<8x128xf32>
    %c0_55 = arith.constant 0 : index
    %c0_56 = arith.constant 0 : index
    %82 = vector.load %arg20[%c0_55, %c0_56] : memref<1x128xf32, #tpu.memory_space<vmem>>, vector<1x128xf32>
    %83 = vector.broadcast %82 : vector<1x128xf32> to vector<8x128xf32>
    %84 = arith.addf %81, %83 : vector<8x128xf32>
    %cst_57 = arith.constant 0.000000e+00 : f32
    %85 = vector.broadcast %cst_57 : f32 to vector<8x128xf32>
    %86 = arith.maximumf %84, %85 : vector<8x128xf32>
    %87 = arith.truncf %86 : vector<8x128xf32> to vector<8x128xbf16>
    %c0_58 = arith.constant 0 : index
    %c0_59 = arith.constant 0 : index
    %88 = vector.load %arg21[%c0_58, %c0_59] : memref<128x2xbf16, #tpu.memory_space<vmem>>, vector<128x2xbf16>
    %cst_60 = arith.constant dense<0.000000e+00> : vector<8x2xf32>
    %89 = tpu.matmul %87, %88, %cst_60 {dimension_numbers = #tpu.dot_dimension_numbers<[1], [0], [0], [1], [0, 0, 1, 1], [], []>} : vector<8x128xbf16>, vector<128x2xbf16>, vector<8x2xf32> -> vector<8x2xf32>
    %c0_61 = arith.constant 0 : index
    %c0_62 = arith.constant 0 : index
    %90 = vector.load %arg22[%c0_61, %c0_62] : memref<1x2xf32, #tpu.memory_space<vmem>>, vector<1x2xf32>
    %91 = vector.broadcast %90 : vector<1x2xf32> to vector<8x2xf32>
    %92 = arith.addf %89, %91 : vector<8x2xf32>
    %cst_63 = arith.constant 0.000000e+00 : f32
    %93 = vector.broadcast %cst_63 : f32 to vector<8x2xf32>
    %94 = arith.maximumf %92, %93 : vector<8x2xf32>
    %95 = math.absf %92 : vector<8x2xf32>
    %cst_64 = arith.constant 0.000000e+00 : f32
    %96 = vector.broadcast %cst_64 : f32 to vector<8x2xf32>
    %97 = arith.subf %96, %95 : vector<8x2xf32>
    %98 = math.exp %97 : vector<8x2xf32>
    %99 = math.log1p %98 : vector<8x2xf32>
    %100 = arith.addf %94, %99 : vector<8x2xf32>
    %cst_65 = arith.constant 1.000000e-01 : f32
    %101 = vector.broadcast %cst_65 : f32 to vector<8x2xf32>
    %102 = arith.addf %100, %101 : vector<8x2xf32>
    %103 = tpu.iota {dimensions = array<i32: 1>} : vector<8x2xi32>
    %c1_i32 = arith.constant 1 : i32
    %104 = vector.broadcast %c1_i32 : i32 to vector<8x2xi32>
    %105 = arith.cmpi slt, %103, %104 : vector<8x2xi32>
    %106 = arith.select %105, %92, %102 : vector<8x2xi1>, vector<8x2xf32>
    %c0_66 = arith.constant 0 : index
    %c0_67 = arith.constant 0 : index
    %107 = vector.load %arg23[%c0_66, %c0_67] : memref<8x2xf32, #tpu.memory_space<vmem>>, vector<8x2xf32>
    tpu.vector_store %arg23[%c0_66, %c0_67], %106 {strides = array<i32>} : memref<8x2xf32, #tpu.memory_space<vmem>>, vector<8x2xf32>,
    return
  }
  func.func @transform_0(%arg0: i32) -> (i32, i32, i32) {
    %c0_i32 = arith.constant 0 : i32
    %c0_i32_0 = arith.constant 0 : i32
    %c0_i32_1 = arith.constant 0 : i32
    return %arg0, %c0_i32, %c0_i32_0 : i32, i32, i32
  }
  func.func @transform_1(%arg0: i32) -> (i32, i32, i32) {
    %c0_i32 = arith.constant 0 : i32
    %c0_i32_0 = arith.constant 0 : i32
    %c0_i32_1 = arith.constant 0 : i32
    return %arg0, %c0_i32, %c0_i32_0 : i32, i32, i32
  }
  func.func @transform_2(%arg0: i32) -> (i32, i32, i32) {
    %c0_i32 = arith.constant 0 : i32
    %c0_i32_0 = arith.constant 0 : i32
    %c0_i32_1 = arith.constant 0 : i32
    return %arg0, %c0_i32, %c0_i32_0 : i32, i32, i32
  }
  func.func @transform_3(%arg0: i32) -> (i32, i32, i32) {
    %c0_i32 = arith.constant 0 : i32
    %c0_i32_0 = arith.constant 0 : i32
    %c0_i32_1 = arith.constant 0 : i32
    return %arg0, %c0_i32, %c0_i32_0 : i32, i32, i32
  }
  func.func @transform_4(%arg0: i32) -> (i32, i32) {
    %c0_i32 = arith.constant 0 : i32
    %c0_i32_0 = arith.constant 0 : i32
    %c0_i32_1 = arith.constant 0 : i32
    return %c0_i32, %c0_i32_0 : i32, i32
  }
  func.func @transform_5(%arg0: i32) -> (i32, i32) {
    %c0_i32 = arith.constant 0 : i32
    %c0_i32_0 = arith.constant 0 : i32
    %c0_i32_1 = arith.constant 0 : i32
    return %c0_i32, %c0_i32_0 : i32, i32
  }
  func.func @transform_6(%arg0: i32) -> (i32, i32) {
    %c0_i32 = arith.constant 0 : i32
    %c0_i32_0 = arith.constant 0 : i32
    %c0_i32_1 = arith.constant 0 : i32
    return %c0_i32, %c0_i32_0 : i32, i32
  }
  func.func @transform_7(%arg0: i32) -> (i32, i32) {
    %c0_i32 = arith.constant 0 : i32
    %c0_i32_0 = arith.constant 0 : i32
    %c0_i32_1 = arith.constant 0 : i32
    return %c0_i32, %c0_i32_0 : i32, i32
  }
  func.func @transform_8(%arg0: i32) -> (i32, i32) {
    %c0_i32 = arith.constant 0 : i32
    %c0_i32_0 = arith.constant 0 : i32
    %c0_i32_1 = arith.constant 0 : i32
    return %c0_i32, %c0_i32_0 : i32, i32
  }
  func.func @transform_9(%arg0: i32) -> (i32, i32) {
    %c0_i32 = arith.constant 0 : i32
    %c0_i32_0 = arith.constant 0 : i32
    %c0_i32_1 = arith.constant 0 : i32
    return %c0_i32, %c0_i32_0 : i32, i32
  }
  func.func @transform_10(%arg0: i32) -> (i32, i32) {
    %c0_i32 = arith.constant 0 : i32
    %c0_i32_0 = arith.constant 0 : i32
    %c0_i32_1 = arith.constant 0 : i32
    return %c0_i32, %c0_i32_0 : i32, i32
  }
  func.func @transform_11(%arg0: i32) -> (i32, i32) {
    %c0_i32 = arith.constant 0 : i32
    %c0_i32_0 = arith.constant 0 : i32
    %c0_i32_1 = arith.constant 0 : i32
    return %c0_i32, %c0_i32_0 : i32, i32
  }
  func.func @transform_12(%arg0: i32) -> (i32, i32) {
    %c0_i32 = arith.constant 0 : i32
    %c0_i32_0 = arith.constant 0 : i32
    %c0_i32_1 = arith.constant 0 : i32
    return %c0_i32, %c0_i32_0 : i32, i32
  }
  func.func @transform_13(%arg0: i32) -> (i32, i32) {
    %c0_i32 = arith.constant 0 : i32
    %c0_i32_0 = arith.constant 0 : i32
    %c0_i32_1 = arith.constant 0 : i32
    return %c0_i32, %c0_i32_0 : i32, i32
  }
  func.func @transform_14(%arg0: i32) -> (i32, i32) {
    %c0_i32 = arith.constant 0 : i32
    %c0_i32_0 = arith.constant 0 : i32
    %c0_i32_1 = arith.constant 0 : i32
    return %c0_i32, %c0_i32_0 : i32, i32
  }
  func.func @transform_15(%arg0: i32) -> (i32, i32) {
    %c0_i32 = arith.constant 0 : i32
    %c0_i32_0 = arith.constant 0 : i32
    %c0_i32_1 = arith.constant 0 : i32
    return %c0_i32, %c0_i32_0 : i32, i32
  }
  func.func @transform_16(%arg0: i32) -> (i32, i32) {
    %c0_i32 = arith.constant 0 : i32
    %c0_i32_0 = arith.constant 0 : i32
    %c0_i32_1 = arith.constant 0 : i32
    return %c0_i32, %c0_i32_0 : i32, i32
  }
  func.func @transform_17(%arg0: i32) -> (i32, i32) {
    %c0_i32 = arith.constant 0 : i32
    %c0_i32_0 = arith.constant 0 : i32
    %c0_i32_1 = arith.constant 0 : i32
    return %c0_i32, %c0_i32_0 : i32, i32
  }
  func.func @transform_18(%arg0: i32) -> (i32, i32) {
    %c0_i32 = arith.constant 0 : i32
    %c0_i32_0 = arith.constant 0 : i32
    %c0_i32_1 = arith.constant 0 : i32
    return %c0_i32, %c0_i32_0 : i32, i32
  }
  func.func @transform_19(%arg0: i32) -> (i32, i32) {
    %c0_i32 = arith.constant 0 : i32
    %c0_i32_0 = arith.constant 0 : i32
    %c0_i32_1 = arith.constant 0 : i32
    return %c0_i32, %c0_i32_0 : i32, i32
  }
  func.func @transform_20(%arg0: i32) -> (i32, i32) {
    %c0_i32 = arith.constant 0 : i32
    %c0_i32_0 = arith.constant 0 : i32
    %c0_i32_1 = arith.constant 0 : i32
    return %c0_i32, %c0_i32_0 : i32, i32
  }
  func.func @transform_21(%arg0: i32) -> (i32, i32) {
    %c0_i32 = arith.constant 0 : i32
    %c0_i32_0 = arith.constant 0 : i32
    %c0_i32_1 = arith.constant 0 : i32
    return %c0_i32, %c0_i32_0 : i32, i32
  }
  func.func @transform_22(%arg0: i32) -> (i32, i32) {
    %c0_i32 = arith.constant 0 : i32
    %c0_i32_0 = arith.constant 0 : i32
    return %arg0, %c0_i32 : i32, i32
  }
}

</mosaic_0001>

<bundles_post_ra>
// kernel: tpu_custom_call.1
= control target key start
LH: loop header
LB: loop body
LE: loop exit
PB: predicated region body
PF: predicated region fallthrough
CT: control target
= control target key end

     0   :  { %s2868_s0 = inlined_call_operand.vmem [shape: f32[2,8,3], index: 0, kind: input, shape index: {}]   ;;  %s2869_s1 = inlined_call_operand.vmem [shape: f32[2,8,1], index: 1, kind: input, shape index: {}]   ;;  %s2870_s2 = inlined_call_operand.vmem [shape: f32[2,8,2], index: 2, kind: input, shape index: {}]   ;;  %s2871_s3 = inlined_call_operand.vmem [shape: f32[2,1,1], index: 3, kind: input, shape index: {}]   ;;  %s2872_s4 = inlined_call_operand.hbm [shape: f32[3,128], index: 4, kind: input, shape index: {}]   ;;  %s2873_s5 = inlined_call_operand.vmem [shape: f32[1,128], index: 5, kind: input, shape index: {}]   ;;  %s2874_s6 = inlined_call_operand.vmem [shape: bf16[128,128], index: 6, kind: input, shape index: {}]   ;;  %s2875_s7 = inlined_call_operand.vmem [shape: f32[1,128], index: 7, kind: input, shape index: {}]   ;;  %s2876_s8 = inlined_call_operand.vmem [shape: bf16[128,128], index: 8, kind: input, shape index: {}]   ;;  %s2877_s9 = inlined_call_operand.vmem [shape: f32[1,128], index: 9, kind: input, shape index: {}]   ;;  %s2878_s10 = inlined_call_operand.hbm [shape: bf16[128,128], index: 10, kind: input, shape index: {}]   ;;  %s2879_s11 = inlined_call_operand.vmem [shape: f32[1,128], index: 11, kind: input, shape index: {}]   ;;  %s2880_s12 = inlined_call_operand.hbm [shape: bf16[128,128], index: 12, kind: input, shape index: {}]   ;;  %s2881_s13 = inlined_call_operand.vmem [shape: f32[2,128], index: 13, kind: input, shape index: {}]   ;;  %s2882_s14 = inlined_call_operand.vmem [shape: f32[1,128], index: 14, kind: input, shape index: {}]   ;;  %s2883_s15 = inlined_call_operand.vmem [shape: f32[1,128], index: 15, kind: input, shape index: {}]   ;;  %s2884_s16 = inlined_call_operand.hbm [shape: bf16[128,128], index: 16, kind: input, shape index: {}]   ;;  %s2885_s17 = inlined_call_operand.vmem [shape: f32[1,128], index: 17, kind: input, shape index: {}]   ;;  %s2886_s18 = inlined_call_operand.hbm [shape: bf16[128,128], index: 18, kind: input, shape index: {}]   ;;  %s2887_s19 = inlined_call_operand.vmem [shape: f32[1,128], index: 19, kind: input, shape index: {}]   ;;  %s2888_s20 = inlined_call_operand.vmem [shape: bf16[128,2], index: 20, kind: input, shape index: {}]   ;;  %s2889_s21 = inlined_call_operand.vmem [shape: f32[1,2], index: 21, kind: input, shape index: {}]   ;;  %s2890_s22 = inlined_call_operand.vmem [shape: f32[16,2], index: 22, kind: output, shape index: {}]  }
   0x1   :  { %2893 = sst [smem:[#allocation14_spill]] %s2868_s0 }
   0x2   :  { %2894 = sst [smem:[#allocation15_spill]] %s2869_s1 }
   0x3   :  { %2895 = sst [smem:[#allocation16_spill]] %s2870_s2 }
   0x4   :  { %2896 = sst [smem:[#allocation17_spill]] %s2871_s3 }
   0x5   :  { %2897 = sst [smem:[#allocation18_spill]] %s2872_s4 }
   0x6   :  { %2898 = sst [smem:[#allocation19_spill]] %s2873_s5 }
   0x7   :  { %2899 = sst [smem:[#allocation20_spill]] %s2874_s6 }
   0x8   :  { %2900 = sst [smem:[#allocation21_spill]] %s2878_s10 }
   0x9   :  { %2901 = sst [smem:[#allocation22_spill]] %s2884_s16 }
   0xa   :  { %2902 = sst [smem:[#allocation23_spill]] %s2889_s21 }
   0xb   :  { %2903 = sst [smem:[#allocation24_spill]] %s2890_s22 }
   0xc   :  { %27 = vsyncpa [#allocation3], 0 }
   0xd   :  { %28 = vsyncpa [#allocation5], 0 }
   0xe   :  { %29 = vsyncpa [#allocation8], 0  ;;  %s2606_s3 = smov 0  }
   0xf LB: > { %2904 = sst [smem:[#allocation13_spill]] %s2481_s3  ;;  %s2615_s4 = sadd.s32 4294967295, %s2481_s3   ;;  %s2481_s3 = sphi %s2606_s3, %s35_s3  }
  0x10   : > { %s2905_s10 = sld [smem:[#allocation21_spill]]  ;;  %p1935_p0 = scmp.ge.s32.totalorder %s2481_s3, 1 }
  0x11   : > { %p548_p1 = scmp.lt.s32.totalorder %s2481_s3, 3  ;;  %p2270_p2 = scmp.eq.s32.totalorder %s2615_s4, 0 }
  0x12   : > { %s2483_s23 = smov [#allocation4]   ;;  %s2907_s16 = sld [smem:[#allocation22_spill]] }
  0x13   : > { %p2620_p3 = pnand %p1935_p0, %p548_p1  ;;  %s588_s1 = sshll.u32 %s2483_s23, 4  ;;  %s589_s1 = int_to_ptr.vmem [resolvable:$true] %s588_s1 }
  0x14   : > { %s2484_s26 = smov [#allocation7]   ;;  %s2909_s29 = sld [smem:[#allocation18_spill]] }
  0x15   : > { %p2254_p4 = pneg %p2620_p3  ;;  %s628_s2 = sshll.u32 %s2484_s26, 4  ;;  %s629_s2 = int_to_ptr.vmem [resolvable:$true] %s628_s2 }
  0x16   : > { %s586_s30 = sshll.u32 %s2905_s10, 4  ;;  %s2485_s10 = smov 64   ;;  %s587_s30 = int_to_ptr.hbm [resolvable:$true] %s586_s30 }
  0x17   : > { %p2631_p5 = pnand %p2270_p2, %p2254_p4  ;;  %s2486_s5 = smov 4  }
  0x18   : > { %s626_s6 = sshll.u32 %s2907_s16, 4  ;;  %s2487_s24 = smov [#allocation2]   ;;  %s627_s6 = int_to_ptr.hbm [resolvable:$true] %s626_s6 }
  0x19   : > { %2260 = dma.hbm_to_vmem [thread:$0]  (!%p2631_p5), %s587_s30, 1024, %s589_s1, [#allocation5], %s2485_s10, %s2485_s10, %s2486_s5  }
  0x1a   : > { %s560_s23 = sshll.u32 %s2909_s29, 4  ;;  %s562_s16 = sshll.u32 %s2487_s24, 4  ;;  %s561_s23 = int_to_ptr.hbm [resolvable:$true] %s560_s23  ;;  %s563_s16 = int_to_ptr.vmem [resolvable:$true] %s562_s16 }
  0x1b   : > { %2266 = dma.hbm_to_vmem [thread:$0]  (!%p2631_p5), %s627_s6, 1024, %s629_s2, [#allocation8], %s2485_s10, %s2485_s10, %s2486_s5  }
  0x1c   : > { %s603_s26 = sshll.u32 %s2880_s12, 4  ;;  %s643_s29 = sshll.u32 %s2886_s18, 4  ;;  %s604_s26 = int_to_ptr.hbm [resolvable:$true] %s603_s26  ;;  %s644_s29 = int_to_ptr.hbm [resolvable:$true] %s643_s29 }
  0x1d   : > { %2257 = dma.hbm_to_vmem [thread:$0]  (!%p2631_p5), %s561_s23, 64, %s563_s16, [#allocation3]  }
  0x1e   : > { %s2488_s21 = smov [#allocation6]   ;;  %s2489_s1 = smov [#allocation9]  }
  0x1f   : > { %s605_s30 = sshll.u32 %s2488_s21, 4  ;;  %s645_s6 = sshll.u32 %s2489_s1, 4  ;;  %s606_s30 = int_to_ptr.vmem [resolvable:$true] %s605_s30  ;;  %s646_s6 = int_to_ptr.vmem [resolvable:$true] %s645_s6 }
  0x20   : > { %2263 = dma.hbm_to_vmem [thread:$0]  (!%p2631_p5), %s604_s26, 1024, %s606_s30, [#allocation5], %s2485_s10, %s2485_s10, %s2486_s5  }
  0x21   : > { %2269 = dma.hbm_to_vmem [thread:$0]  (!%p2631_p5), %s644_s29, 1024, %s646_s6, [#allocation8], %s2485_s10, %s2485_s10, %s2486_s5  }
  0x22   : > { %697 = sbr.rel (%p2620_p3) target bundleno = 1216 (0x4c0), region = 108 }
  0x27   : > { %2468 = dma.done.wait (%p2270_p2), [#allocation3], 64  }
  0x28   : > { %2470 = vsyncadd (%p2270_p2), [#allocation3], 4294967232 }
  0x29   : > { %2472 = dma.done.wait (%p2270_p2), [#allocation5], 2048  }
  0x2a   : > { %2474 = vsyncadd (%p2270_p2), [#allocation5], 4294965248 }
  0x2b   : > { %2476 = dma.done.wait (%p2270_p2), [#allocation8], 2048  }
  0x2c   : > { %2478 = vsyncadd (%p2270_p2), [#allocation8], 4294965248  ;;  %v811_v0 = vlaneseq  ;;  %p789_p6 = scmp.lt.s32.totalorder %s2615_s4, 1  ;;  %s2910_s22 = sld [smem:[#allocation14_spill]]  ;;  %v2700_v20 = vld [vmem:[#allocation2] sm:$0x7] }
  0x2d   : > { %s2911_s2 = sld [smem:[#allocation16_spill]]  ;;  %vm874_vm0 = vcmask 1042432   ;;  %vm996_vm1 = vcmask 1041409   ;;  %vm999_vm2 = vcmask 1042434   ;;  %vm1002_vm3 = vcmask 1043459  }
  0x2e   : > { %v2670_v1 = vshrl.u32 %v811_v0, 7  ;;  %s2920_s4 = smov (!%p789_p6, %s2615_s4), 1  ;;  %s2912_s26 = sld [smem:[#allocation20_spill]]  ;;  %vm1005_vm4 = vcmask 1044484   ;;  %vm1008_vm5 = vcmask 1045509   ;;  %vm1011_vm6 = vcmask 1046534  }
  0x2f   : > { %s2678_s10 = sshll.u32 %s2920_s4, 3  ;;  %s2913_s27 = sld [smem:[#allocation19_spill]]  ;;  %vm1014_vm7 = vcmask 1047559   ;;  %vm1414_vm8 = vcmask 1041408   ;;  %vm1795_vm11 = vcmask 15360  }
  0x30   : > { %2297 = vset.pattern.permute.xlu1 %v2670_v1  ;;  %2296 = vset.pattern.permute.xlu0 %v2670_v1  ;;  %s2914_s6 = sld [smem:[#allocation15_spill]] }
  0x31   : > { %2298 = vset.pattern.permute.xlu2 %v2670_v1 }
  0x32   : > { %s792_s3 = scalar_lea.vmem %s2910_s22, %s2678_s10 }
  0x33   : > { %v808_v2 = vld [vmem:[%s792_s3] sm:$0xff]  ;;  %s800_s23 = scalar_lea.vmem %s2911_s2, %s2678_s10  ;;  %s2916_s3 = sld [smem:[#allocation23_spill]] }
  0x34   : > { %v817_v3 = vperm.slane %v808_v2, 1  ;;  %v810_v4 = vperm.slane %v808_v2, 0  ;;  %v838_v5 = vperm.slane %v808_v2, 4  ;;  %v824_v6 = vperm.slane %v808_v2, 2  ;;  %v2689_v11 = vld [vmem:[%s800_s23] sm:$0xff]  ;;  %v2185_v19 = vld [vmem:[%s2912_s26 + $0x38] sm:$0xff] }
  0x35   : > { %v831_v7 = vperm.slane %v808_v2, 3  ;;  %v845_v8 = vperm.slane %v808_v2, 5  ;;  %v852_v9 = vperm.slane %v808_v2, 6  ;;  %v859_v10 = vperm.slane %v808_v2, 7  ;;  %1066 = vmatpush.bf16.msra.mxu0 %v2185_v19  ;;  %v2184_v21 = vld [vmem:[%s2912_s26 + $0x30] sm:$0xff]  ;;  %v2183_v24 = vld [vmem:[%s2912_s26 + $0x28] sm:$0xff] }
  0x36   : > { %v1357_v12 = vperm.slane %v2689_v11, 1  ;;  %v1364_v13 = vperm.slane %v2689_v11, 2  ;;  %v1371_v14 = vperm.slane %v2689_v11, 3  ;;  %v1378_v15 = vperm.slane %v2689_v11, 4  ;;  %v2182_v27 = vld [vmem:[%s2912_s26 + $0x20] sm:$0xff]  ;;  %v2181_v30 = vld [vmem:[%s2912_s26 + $0x18] sm:$0xff]  ;;  %s796_s16 = scalar_lea.vmem %s2914_s6, %s2678_s10 }
  0x37   : > { %v1392_v16 = vperm.slane %v2689_v11, 6  ;;  %v1399_v17 = vperm.slane %v2689_v11, 7  ;;  %v2180_v37 = vld [vmem:[%s2912_s26 + $0x10] sm:$0xff]  ;;  %v2179_v46 = vld [vmem:[%s2912_s26 + $0x8] sm:$0xff]  ;;  %v2178_v57 = vld [vmem:[%s2912_s26] sm:$0xff]  ;;  %s2915_s23 = sld [smem:[#allocation17_spill]] }
  0x38   : > { %822 = vperm.xlu0 %2296, %v817_v3   ;;  %815 = vperm.xlu1 %2297, %v810_v4   ;;  %v2738_v62 = vld [vmem:[%s2913_s27] ss:$0 sm:$0xff]  ;;  %s2917_s2 = sld [smem:[#allocation24_spill]] }
  0x39   : > { %843 = vperm.xlu2 %2298, %v838_v5   ;;  %1067 = vmatpush.bf16.msra.mxu0 %v2184_v21 }
  0x3d   : > { %1068 = vmatpush.bf16.msra.mxu0 %v2183_v24  ;;  %s803_s5 = scalar_lea.vmem %s2915_s23, %s2920_s4 }
  0x3e   : > { %s807_s23 = scalar_lea.vmem %s2917_s2, %s2678_s10 }
  0x40   : > { %829 = vperm.xlu0 %2296, %v824_v6   ;;  %836 = vperm.xlu1 %2297, %v831_v7  }
  0x41   : > { %850 = vperm.xlu2 %2298, %v845_v8   ;;  %1069 = vmatpush.bf16.msra.mxu0 %v2182_v27 }
  0x45   : > { %1070 = vmatpush.bf16.msra.mxu0 %v2181_v30 }
  0x48   : > { %857 = vperm.xlu0 %2296, %v852_v9   ;;  %864 = vperm.xlu1 %2297, %v859_v10  }
  0x49   : > { %1071 = vmatpush.bf16.msra.mxu0 %v2180_v37 }
  0x4d   : > { %1072 = vmatpush.bf16.msra.mxu0 %v2179_v46 }
  0x50   : > { %1362 = vperm.xlu0 %2296, %v1357_v12   ;;  %1369 = vperm.xlu1 %2297, %v1364_v13  }
  0x51   : > { %1073 = vmatpush.bf16.msra.mxu0 %v2178_v57 }
  0x58   : > { %1376 = vperm.xlu0 %2296, %v1371_v14   ;;  %1383 = vperm.xlu1 %2297, %v1378_v15  }
  0x60   : > { %1397 = vperm.xlu0 %2296, %v1392_v16   ;;  %1404 = vperm.xlu1 %2297, %v1399_v17  }
  0x93   : > { %v844_v18 = vpop.permute.xlu2 %843 }
  0x94   : > { %v870_v22 = vmul.f32 %v844_v18, %v2700_v20 }
  0x96   : > { %v903_v25 = vsel %vm874_vm0, %v870_v22, 0.0 }
  0x97   : > { %v904_v28 = vrot.slane %v903_v25, 4 }
  0x99   : > { %v905_v31 = vadd.f32 %v904_v28, %v903_v25 }
  0x9b   : > { %v851_v23 = vpop.permute.xlu2 %850  ;;  %v906_v38 = vrot.slane %v905_v31, 2 }
  0x9c   : > { %v871_v26 = vmul.f32 %v851_v23, %v2700_v20 }
  0x9d   : > { %v907_v47 = vadd.f32 %v906_v38, %v905_v31 }
  0x9e   : > { %v910_v29 = vsel %vm874_vm0, %v871_v26, 0.0 }
  0x9f   : > { %v911_v32 = vrot.slane %v910_v29, 4  ;;  %v908_v58 = vrot.slane %v907_v47, 1 }
  0xa1   : > { %v912_v41 = vadd.f32 %v911_v32, %v910_v29  ;;  %v909_v8 = vadd.f32 %v908_v58, %v907_v47 }
  0xa3   : > { %v913_v48 = vrot.slane %v912_v41, 2  ;;  %v939_v26 = vadd.f32 %v2738_v62, %v909_v8 }
  0xa5   : > { %v914_v59 = vadd.f32 %v913_v48, %v912_v41  ;;  %v947_v38 = vmax.f32 %v939_v26, 0.0 }
  0xa7   : > { %v915_v12 = vrot.slane %v914_v59, 1 }
  0xa9   : > { %v916_v27 = vadd.f32 %v915_v12, %v914_v59 }
  0xaa   : > { %v823_v33 = vpop.permute.xlu0 %822  ;;  %v816_v34 = vpop.permute.xlu1 %815 }
  0xab   : > { %v867_v35 = vmul.f32 %v823_v33, %v2700_v20  ;;  %v866_v36 = vmul.f32 %v816_v34, %v2700_v20 }
  0xad   : > { %v882_v39 = vsel %vm874_vm0, %v867_v35, 0.0  ;;  %v875_v40 = vsel %vm874_vm0, %v866_v36, 0.0 }
  0xae   : > { %v883_v42 = vrot.slane %v882_v39, 4  ;;  %v876_v43 = vrot.slane %v875_v40, 4 }
  0xb0   : > { %v884_v44 = vadd.f32 %v883_v42, %v882_v39  ;;  %v877_v45 = vadd.f32 %v876_v43, %v875_v40  ;;  %v940_v39 = vadd.f32 %v2738_v62, %v916_v27  ;;  %v2192_v42 = vld [vmem:[%s2876_s8 + $0x30] sm:$0xff] }
  0xb2   : > { %v885_v49 = vrot.slane %v884_v44, 2  ;;  %v878_v50 = vrot.slane %v877_v45, 2  ;;  %v830_v51 = vpop.permute.xlu0 %829  ;;  %v837_v52 = vpop.permute.xlu1 %836 }
  0xb3   : > { %v868_v53 = vmul.f32 %v830_v51, %v2700_v20  ;;  %v869_v54 = vmul.f32 %v837_v52, %v2700_v20  ;;  %v955_v51 = vpack.c.bf16 %v947_v38, %v947_v38  ;;  %v948_v52 = vmax.f32 %v940_v39, 0.0  ;;  %v2196_v38 = vld [vmem:[#allocation4 + $0x10] sm:$0xff]  ;;  %v2303_v39 = vld [vmem:[%s2875_s7] ss:$0 sm:$0xff] }
  0xb4   : > { %v886_v55 = vadd.f32 %v885_v49, %v884_v44  ;;  %v879_v56 = vadd.f32 %v878_v50, %v877_v45 }
  0xb5   : > { %v889_v60 = vsel %vm874_vm0, %v868_v53, 0.0  ;;  %v896_v61 = vsel %vm874_vm0, %v869_v54, 0.0 }
  0xb6   : > { %v887_v63 = vrot.slane %v886_v55, 1  ;;  %v880_v2 = vrot.slane %v879_v56, 1  ;;  %v890_v3 = vrot.slane %v889_v60, 4  ;;  %v897_v4 = vrot.slane %v896_v61, 4 }
  0xb8   : > { %v888_v5 = vadd.f32 %v887_v63, %v886_v55  ;;  %v891_v6 = vadd.f32 %v890_v3, %v889_v60  ;;  %v898_v7 = vadd.f32 %v897_v4, %v896_v61  ;;  %v881_v9 = vadd.f32 %v880_v2, %v879_v56  ;;  %v2191_v55 = vld [vmem:[%s2876_s8 + $0x28] sm:$0xff] }
  0xb9   : > { %v991_v3 = vunpack.c.l.b16 %v955_v51  ;;  %v956_v4 = vpack.c.bf16 %v948_v52, %v948_v52  ;;  %v2207_v51 = vld [vmem:[#allocation6 + $0x28] sm:$0xff]  ;;  %v2304_v52 = vld [vmem:[%s2877_s9] ss:$0 sm:$0xff] }
  0xba   : > { %v936_v10 = vadd.f32 %v2738_v62, %v888_v5  ;;  %v892_v13 = vrot.slane %v891_v6, 2  ;;  %v899_v14 = vrot.slane %v898_v7, 2  ;;  %v858_v15 = vpop.permute.xlu0 %857  ;;  %v865_v16 = vpop.permute.xlu1 %864  ;;  %v935_v23 = vadd.f32 %v2738_v62, %v881_v9 }
  0xbb   : > { %v872_v17 = vmul.f32 %v858_v15, %v2700_v20  ;;  %v873_v18 = vmul.f32 %v865_v16, %v2700_v20  ;;  %v2193_v20 = vld [vmem:[%s2876_s8 + $0x38] sm:$0xff]  ;;  %v992_v15 = vunpack.c.l.b16 %v956_v4 }
  0xbc   : > { %v944_v19 = vmax.f32 %v936_v10, 0.0  ;;  %v893_v21 = vadd.f32 %v892_v13, %v891_v6  ;;  %v900_v22 = vadd.f32 %v899_v14, %v898_v7  ;;  %v943_v35 = vmax.f32 %v935_v23, 0.0  ;;  %1149 = vmatpush.bf16.msra.mxu1 %v2193_v20  ;;  %v2190_v6 = vld [vmem:[%s2876_s8 + $0x20] sm:$0xff]  ;;  %v2189_v16 = vld [vmem:[%s2876_s8 + $0x18] sm:$0xff] }
  0xbd   : > { %v917_v24 = vsel %vm874_vm0, %v872_v17, 0.0  ;;  %v924_v25 = vsel %vm874_vm0, %v873_v18, 0.0  ;;  %v1004_v17 = vrot.slane %v991_v3, 4  ;;  %v2200_v20 = vld [vmem:[#allocation4 + $0x30] sm:$0xff]  ;;  %v2305_v3 = vld [vmem:[%s2879_s11] ss:$0 sm:$0xff] }
  0xbe   : > { %v894_v28 = vrot.slane %v893_v21, 1  ;;  %v901_v29 = vrot.slane %v900_v22, 1  ;;  %v952_v30 = vpack.c.bf16 %v944_v19, %v944_v19  ;;  %v918_v31 = vrot.slane %v917_v24, 4 }
  0xbf   : > { %v925_v32 = vrot.slane %v924_v25, 4  ;;  %v951_v48 = vpack.c.bf16 %v943_v35, %v943_v35  ;;  %v2199_v35 = vld [vmem:[#allocation4 + $0x28] sm:$0xff] }
  0xc0   : > { %v895_v33 = vadd.f32 %v894_v28, %v893_v21  ;;  %v902_v34 = vadd.f32 %v901_v29, %v900_v22  ;;  %v919_v36 = vadd.f32 %v918_v31, %v917_v24  ;;  %v988_v43 = vunpack.c.l.b16 %v952_v30  ;;  %1150 = vmatpush.bf16.msra.mxu1 %v2192_v42 }
  0xc1   : > { %v926_v37 = vadd.f32 %v925_v32, %v924_v25  ;;  %v987_v61 = vunpack.c.l.b16 %v951_v48  ;;  %v1007_v24 = vrot.slane %v992_v15, 3  ;;  %v2188_v25 = vld [vmem:[%s2876_s8 + $0x10] sm:$0xff]  ;;  %v2187_v32 = vld [vmem:[%s2876_s8 + $0x8] sm:$0xff]  ;;  %v2209_v48 = vld [vmem:[#allocation6 + $0x38] sm:$0xff] }
  0xc2   : > { %v937_v40 = vadd.f32 %v2738_v62, %v895_v33  ;;  %v938_v41 = vadd.f32 %v2738_v62, %v902_v34  ;;  %v920_v44 = vrot.slane %v919_v36, 2  ;;  %v995_v56 = vrot.slane %v988_v43, 7  ;;  %v2186_v33 = vld [vmem:[%s2876_s8] sm:$0xff]  ;;  %1325 = vmatpush.bf16.msra.mxu3 %v2209_v48 }
  0xc3   : > { %v927_v45 = vrot.slane %v926_v37, 2  ;;  %v2201_v34 = vld [vmem:[#allocation4 + $0x38] sm:$0xff] }
  0xc4   : > { %v945_v46 = vmax.f32 %v937_v40, 0.0  ;;  %v946_v47 = vmax.f32 %v938_v41, 0.0  ;;  %v921_v49 = vadd.f32 %v920_v44, %v919_v36  ;;  %1151 = vmatpush.bf16.msra.mxu1 %v2191_v55  ;;  %v997_v10 = vsel %vm996_vm1, %v995_v56, %v987_v61  ;;  %1232 = vmatpush.bf16.msra.mxu2 %v2201_v34  ;;  %v2198_v36 = vld [vmem:[#allocation4 + $0x20] sm:$0xff]  ;;  %v2203_v61 = vld [vmem:[#allocation6 + $0x8] sm:$0xff] }
  0xc5   : > { %v928_v50 = vadd.f32 %v927_v45, %v926_v37  ;;  %v2197_v37 = vld [vmem:[#allocation4 + $0x18] sm:$0xff]  ;;  %v2195_v45 = vld [vmem:[#allocation4 + $0x8] sm:$0xff] }
  0xc6   : > { %v953_v53 = vpack.c.bf16 %v945_v46, %v945_v46  ;;  %v954_v54 = vpack.c.bf16 %v946_v47, %v946_v47  ;;  %v922_v57 = vrot.slane %v921_v49, 1  ;;  %v2194_v46 = vld [vmem:[#allocation4] sm:$0xff] }
  0xc7   : > { %v929_v58 = vrot.slane %v928_v50, 1  ;;  %v1245_v47 = vld [vmem:[%s796_s16] sm:$0xff] }
  0xc8   : > { %v989_v59 = vunpack.c.l.b16 %v953_v53  ;;  %v990_v60 = vunpack.c.l.b16 %v954_v54  ;;  %v923_v63 = vadd.f32 %v922_v57, %v921_v49  ;;  %1152 = vmatpush.bf16.msra.mxu1 %v2190_v6  ;;  %1233 = vmatpush.bf16.msra.mxu2 %v2200_v20  ;;  %v2490_v49 = vmov 0  }
  0xc9   : > { %v930_v2 = vadd.f32 %v929_v58, %v928_v50  ;;  %2299 = vset.pattern.permute.xlu2 %v2490_v49  ;;  %v2208_v50 = vld [vmem:[#allocation6 + $0x30] sm:$0xff]  ;;  %v2206_v58 = vld [vmem:[#allocation6 + $0x20] sm:$0xff] }
  0xca   : > { %v998_v5 = vrot.slane %v989_v59, 6  ;;  %v1001_v7 = vrot.slane %v990_v60, 5  ;;  %v941_v8 = vadd.f32 %v2738_v62, %v923_v63  ;;  %1248 = vperm.xlu2 %2299, %v1245_v47   ;;  %1326 = vmatpush.bf16.msra.mxu3 %v2208_v50  ;;  %v2205_v59 = vld [vmem:[#allocation6 + $0x18] sm:$0xff]  ;;  %v2204_v60 = vld [vmem:[#allocation6 + $0x10] sm:$0xff]  ;;  %v1350_v63 = vperm.slane %v2689_v11, 0  ;;  %v2211_v47 = vld [vmem:[#allocation7 + $0x8] sm:$0xff] }
  0xcb   : > { %v942_v9 = vadd.f32 %v2738_v62, %v930_v2  ;;  %v1385_v2 = vperm.slane %v2689_v11, 5 }
  0xcc   : > { %v1000_v12 = vsel %vm999_vm2, %v998_v5, %v997_v10  ;;  %v949_v13 = vmax.f32 %v941_v8, 0.0  ;;  %1153 = vmatpush.bf16.msra.mxu1 %v2189_v16  ;;  %1234 = vmatpush.bf16.msra.mxu2 %v2199_v35  ;;  %v1275_v8 = vld [vmem:[%s803_s5] sm:$0x1] }
  0xcd   : > { %v950_v14 = vmax.f32 %v942_v9, 0.0  ;;  %v1003_v21 = vsel %vm1002_vm3, %v1001_v7, %v1000_v12 }
  0xce   : > { %v957_v18 = vpack.c.bf16 %v949_v13, %v949_v13  ;;  %v1006_v23 = vsel %vm1005_vm4, %v1004_v17, %v1003_v21  ;;  %1327 = vmatpush.bf16.msra.mxu3 %v2207_v51  ;;  %v2217_v17 = vld [vmem:[#allocation7 + $0x38] sm:$0xff]  ;;  %v1370_v21 = vpop.permute.xlu1 %1369 }
  0xcf   : > { %v958_v19 = vpack.c.bf16 %v950_v14, %v950_v14  ;;  %v1009_v28 = vsel %vm1008_vm5, %v1007_v24, %v1006_v23  ;;  %1596 = vmatpush.bf16.msrb.mxu0 %v2217_v17  ;;  %v2215_v24 = vld [vmem:[#allocation7 + $0x28] sm:$0xff] }
  0xd0   : > { %v993_v62 = vunpack.c.l.b16 %v957_v18  ;;  %1154 = vmatpush.bf16.msra.mxu1 %v2188_v25  ;;  %1235 = vmatpush.bf16.msra.mxu2 %v2198_v36  ;;  %v2216_v18 = vld [vmem:[#allocation7 + $0x30] sm:$0xff]  ;;  %v2214_v25 = vld [vmem:[#allocation7 + $0x20] sm:$0xff] }
  0xd1   : > { %v994_v22 = vunpack.c.l.b16 %v958_v19  ;;  %v1363_v19 = vpop.permute.xlu0 %1362 }
  0xd2   : > { %v1010_v26 = vrot.slane %v993_v62, 2  ;;  %2300 = vset.pattern.permute.xlu2 %v2670_v1  ;;  %1328 = vmatpush.bf16.msra.mxu3 %v2206_v58  ;;  %v2202_v1 = vld [vmem:[#allocation6] sm:$0xff] }
  0xd3   : > { %v1013_v27 = vrot.slane %v994_v22, 1  ;;  %1597 = vmatpush.bf16.msrb.mxu0 %v2216_v18 }
  0xd4   : > { %v1012_v29 = vsel %vm1011_vm6, %v1010_v26, %v1009_v28  ;;  %1155 = vmatpush.bf16.msra.mxu1 %v2187_v32  ;;  %1236 = vmatpush.bf16.msra.mxu2 %v2197_v37  ;;  %v1349_v26 = vld [vmem:[%s2881_s13] sm:$0x3] }
  0xd5   : > { %v1015_v30 = vsel %vm1014_vm7, %v1013_v27, %v1012_v29  ;;  %v1408_v32 = vmul.f32 %v1370_v21, %v1349_v26 }
  0xd6   : > { %v1016_v31 = vpack.c.b16 %v1015_v30, %v1015_v30  ;;  %1329 = vmatpush.bf16.msra.mxu3 %v2205_v59  ;;  %v1384_v22 = vpop.permute.xlu1 %1383  ;;  %v2213_v30 = vld [vmem:[#allocation7 + $0x18] sm:$0xff] }
  0xd7   : > { %1598 = vmatpush.bf16.msrb.mxu0 %v2215_v24  ;;  %v1410_v20 = vmul.f32 %v1384_v22, %v1349_v26  ;;  %v1276_v24 = vld [vmem:[%s2883_s15] sm:$0x1] }
  0xd8   : > { %1074 = vmatmul.bf16.vlgmr.msra.gmra.mxu0 %v1016_v31  ;;  %1156 = vmatpush.bf16.msra.mxu1 %v2186_v33  ;;  %v1407_v31 = vmul.f32 %v1363_v19, %v1349_v26 }
  0xd9   : > { %1237 = vmatpush.bf16.msra.mxu2 %v2196_v38  ;;  %v1377_v62 = vpop.permute.xlu0 %1376  ;;  %v2212_v38 = vld [vmem:[#allocation7 + $0x10] sm:$0xff] }
  0xda   : > { %1330 = vmatpush.bf16.msra.mxu3 %v2204_v60  ;;  %1355 = vperm.xlu2 %2300, %v1350_v63   ;;  %v1409_v33 = vmul.f32 %v1377_v62, %v1349_v26 }
  0xdb   : > { %1599 = vmatpush.bf16.msrb.mxu0 %v2214_v25 }
  0xdd   : > { %1238 = vmatpush.bf16.msra.mxu2 %v2195_v45 }
  0xde   : > { %1331 = vmatpush.bf16.msra.mxu3 %v2203_v61  ;;  %v1405_v28 = vpop.permute.xlu1 %1404 }
  0xdf   : > { %v1413_v36 = vmul.f32 %v1405_v28, %v1349_v26  ;;  %1600 = vmatpush.bf16.msrb.mxu0 %v2213_v30  ;;  %v2223_v28 = vld [vmem:[#allocation9 + $0x28] sm:$0xff] }
  0xe1   : > { %1239 = vmatpush.bf16.msra.mxu2 %v2194_v46  ;;  %v1398_v27 = vpop.permute.xlu0 %1397  ;;  %v1464_v45 = vsel %vm1414_vm8, %v1413_v36, 0.0 }
  0xe2   : > { %1332 = vmatpush.bf16.msra.mxu3 %v2202_v1  ;;  %1390 = vperm.xlu2 %2300, %v1385_v2   ;;  %v1412_v35 = vmul.f32 %v1398_v27, %v1349_v26 }
  0xe3   : > { %1601 = vmatpush.bf16.msrb.mxu0 %v2212_v38  ;;  %v2222_v38 = vld [vmem:[#allocation9 + $0x20] sm:$0xff] }
  0xe7   : > { %1602 = vmatpush.bf16.msrb.mxu0 %v2211_v47 }
  0xea   : > { %2301 = vset.pattern.permute.xlu2 %v2490_v49 }
  0xeb   : > { %1341 = vperm.xlu2 %2301, %v1275_v8  }
 0x124   : > { %v1249_v5 = vpop.permute.xlu2 %1248 }
 0x134   : > { %v1356_v23 = vpop.permute.xlu2 %1355 }
 0x135   : > { %v1406_v34 = vmul.f32 %v1356_v23, %v1349_v26 }
 0x13c   : > { %v1391_v29 = vpop.permute.xlu2 %1390 }
 0x13d   : > { %v1411_v37 = vmul.f32 %v1391_v29, %v1349_v26 }
 0x13f   : > { %v1450_v46 = vsel %vm1414_vm8, %v1411_v37, 0.0 }
 0x155   : > { %v1075_v40 = vpop.f32.mrf.mxu0 }
 0x156   : > { %v1076_v41 = vadd.f32 %v2303_v39, %v1075_v40  ;;  %v1422_v39 = vsel %vm1414_vm8, %v1407_v31, 0.0  ;;  %v1429_v40 = vsel %vm1414_vm8, %v1408_v32, 0.0 }
 0x157   : > { %v1423_v48 = vrot.slane %v1422_v39, 4  ;;  %v1430_v49 = vrot.slane %v1429_v40, 4 }
 0x158   : > { %v1079_v42 = vmax.f32 %v1076_v41, 0.0  ;;  %v1436_v41 = vsel %vm1414_vm8, %v1409_v33, 0.0 }
 0x159   : > { %v1437_v50 = vrot.slane %v1436_v41, 4  ;;  %v1431_v58 = vadd.f32 %v1430_v49, %v1429_v40 }
 0x15a   : > { %v1080_v43 = vpack.c.bf16 %v1079_v42, %v1079_v42  ;;  %v1415_v42 = vsel %vm1414_vm8, %v1406_v34, 0.0 }
 0x15b   : > { %v1416_v51 = vrot.slane %v1415_v42, 4  ;;  %v1438_v59 = vadd.f32 %v1437_v50, %v1436_v41 }
 0x15c   : > { %1157 = vmatmul.bf16.vlgmr.msra.gmra.mxu1 %v1080_v43  ;;  %v1443_v43 = vsel %vm1414_vm8, %v1410_v20, 0.0 }
 0x15d   : > { %v1077_v44 = vpop.f32.mrf.mxu0  ;;  %v1417_v60 = vadd.f32 %v1416_v51, %v1415_v42 }
 0x15e   : > { %v1457_v44 = vsel %vm1414_vm8, %v1412_v35, 0.0 }
 0x1d9   : > { %v1158_v53 = vpop.f32.mrf.mxu1 }
 0x1da   : > { %v1159_v54 = vadd.f32 %v2304_v52, %v1158_v53  ;;  %v1444_v52 = vrot.slane %v1443_v43, 4  ;;  %v1458_v53 = vrot.slane %v1457_v44, 4 }
 0x1dc   : > { %v1162_v55 = vmax.f32 %v1159_v54, 0.0  ;;  %v1465_v54 = vrot.slane %v1464_v45, 4  ;;  %v1445_v61 = vadd.f32 %v1444_v52, %v1443_v43  ;;  %v1459_v1 = vadd.f32 %v1458_v53, %v1457_v44 }
 0x1de   : > { %v1163_v56 = vpack.c.bf16 %v1162_v55, %v1162_v55  ;;  %v1451_v55 = vrot.slane %v1450_v46, 4  ;;  %v1466_v63 = vadd.f32 %v1465_v54, %v1464_v45  ;;  %v1446_v8 = vrot.slane %v1445_v61, 2 }
 0x1e0   : > { %1240 = vmatmul.bf16.vlgmr.msra.gmra.mxu2 %v1163_v56  ;;  %v2210_v56 = vld [vmem:[#allocation7] sm:$0xff]  ;;  %v1452_v2 = vadd.f32 %v1451_v55, %v1450_v46  ;;  %v1447_v21 = vadd.f32 %v1446_v8, %v1445_v61 }
 0x1e1   : > { %v1160_v57 = vpop.f32.mrf.mxu1  ;;  %1603 = vmatpush.bf16.msrb.mxu0 %v2210_v56  ;;  %v2221_v56 = vld [vmem:[#allocation9 + $0x18] sm:$0xff] }
 0x1e2   : > { %v1424_v57 = vadd.f32 %v1423_v48, %v1422_v39  ;;  %v1448_v33 = vrot.slane %v1447_v21, 1 }
 0x1e4   : > { %v1449_v43 = vadd.f32 %v1448_v33, %v1447_v21 }
 0x263   : > { %v1241_v4 = vpop.f32.mrf.mxu2 }
 0x264   : > { %v1242_v6 = vadd.f32 %v2305_v3, %v1241_v4  ;;  %v1425_v3 = vrot.slane %v1424_v57, 2  ;;  %v1342_v4 = vpop.permute.xlu2 %1341 }
 0x266   : > { %v1251_v7 = vmul.f32 %v1249_v5, %v1242_v6  ;;  %v1432_v5 = vrot.slane %v1431_v58, 2  ;;  %v1439_v6 = vrot.slane %v1438_v59, 2 }
 0x268   : > { %v1252_v9 = vrot.slane %v1251_v7, 4  ;;  %v1433_v17 = vadd.f32 %v1432_v5, %v1431_v58  ;;  %v1440_v18 = vadd.f32 %v1439_v6, %v1438_v59 }
 0x26a   : > { %v1253_v10 = vadd.f32 %v1252_v9, %v1251_v7  ;;  %v1418_v7 = vrot.slane %v1417_v60, 2  ;;  %v1460_v9 = vrot.slane %v1459_v1, 2  ;;  %v1434_v29 = vrot.slane %v1433_v17, 1 }
 0x26b   : > { %v1243_v12 = vpop.f32.mrf.mxu2  ;;  %v1441_v30 = vrot.slane %v1440_v18, 1 }
 0x26c   : > { %v1254_v11 = vrot.slane %v1253_v10, 2  ;;  %v1453_v12 = vrot.slane %v1452_v2, 2  ;;  %v1419_v19 = vadd.f32 %v1418_v7, %v1417_v60  ;;  %v1461_v62 = vadd.f32 %v1460_v9, %v1459_v1 }
 0x26d   : > { %v1435_v39 = vadd.f32 %v1434_v29, %v1433_v17  ;;  %v1442_v40 = vadd.f32 %v1441_v30, %v1440_v18 }
 0x26e   : > { %v1255_v13 = vadd.f32 %v1254_v11, %v1253_v10  ;;  %v1467_v10 = vrot.slane %v1466_v63, 2  ;;  %v2225_v11 = vld [vmem:[#allocation9 + $0x38] sm:$0xff]  ;;  %v1454_v23 = vadd.f32 %v1453_v12, %v1452_v2  ;;  %v1420_v31 = vrot.slane %v1419_v19, 1 }
 0x26f   : > { %1679 = vmatpush.bf16.msrb.mxu1 %v2225_v11  ;;  %v1462_v34 = vrot.slane %v1461_v62, 1 }
 0x270   : > { %v1256_v14 = vrot.slane %v1255_v13, 1  ;;  %v1468_v22 = vadd.f32 %v1467_v10, %v1466_v63  ;;  %v1455_v35 = vrot.slane %v1454_v23, 1  ;;  %v1421_v41 = vadd.f32 %v1420_v31, %v1419_v19  ;;  %v2220_v10 = vld [vmem:[#allocation9 + $0x10] sm:$0xff] }
 0x271   : > { %v1463_v44 = vadd.f32 %v1462_v34, %v1461_v62 }
 0x272   : > { %v1257_v15 = vadd.f32 %v1256_v14, %v1255_v13  ;;  %v1344_v13 = vperm.slane %v1342_v4, 0  ;;  %v1426_v14 = vadd.f32 %v1425_v3, %v1424_v57  ;;  %v1469_v20 = vrot.slane %v1468_v22, 1 }
 0x273   : > { %v1456_v46 = vadd.f32 %v1455_v35, %v1454_v23  ;;  %v2218_v35 = vld [vmem:[#allocation9] sm:$0xff] }
 0x274   : > { %v1258_v16 = vpack.c.bf16 %v1257_v15, %v1257_v15  ;;  %v1338_v15 = vld [vmem:[%s2882_s14] sm:$0x1]  ;;  %v1427_v26 = vrot.slane %v1426_v14, 1  ;;  %v1470_v45 = vadd.f32 %v1469_v20, %v1468_v22  ;;  %v2219_v20 = vld [vmem:[#allocation9 + $0x8] sm:$0xff] }
 0x275   : > { %v1345_v25 = vmul.f32 %v1344_v13, %v1338_v15 }
 0x276   : > { %1333 = vmatmul.bf16.vlgmr.msra.gmra.mxu3 %v1258_v16  ;;  %v2224_v16 = vld [vmem:[#allocation9 + $0x30] sm:$0xff]  ;;  %v1428_v37 = vadd.f32 %v1427_v26, %v1426_v14 }
 0x277   : > { %1680 = vmatpush.bf16.msrb.mxu1 %v2224_v16 }
 0x27b   : > { %1681 = vmatpush.bf16.msrb.mxu1 %v2223_v28 }
 0x27f   : > { %1682 = vmatpush.bf16.msrb.mxu1 %v2222_v38  ;;  %v2231_v38 = vld [vmem:[%s2888_s20 + $0x28] sm:$0xff] }
 0x283   : > { %1683 = vmatpush.bf16.msrb.mxu1 %v2221_v56  ;;  %v2308_v56 = vld [vmem:[%s2916_s3] ss:$0 sm:$0xff] }
 0x287   : > { %1684 = vmatpush.bf16.msrb.mxu1 %v2220_v10 }
 0x28b   : > { %1685 = vmatpush.bf16.msrb.mxu1 %v2219_v20 }
 0x28f   : > { %1686 = vmatpush.bf16.msrb.mxu1 %v2218_v35 }
 0x2f9   : > { %v1334_v27 = vpop.f32.mrf.mxu3 }
 0x2fa   : > { %v1335_v32 = vadd.f32 %v1334_v27, %v1276_v24 }
 0x2fc   : > { %v1347_v36 = vadd.f32 %v1345_v25, %v1335_v32 }
 0x2fe   : > { %v1471_v42 = vperm.slane %v1347_v36, 0  ;;  %v2233_v36 = vld [vmem:[%s2888_s20 + $0x38] sm:$0xff] }
 0x2ff   : > { %1762 = vmatpush.bf16.msrb.mxu2 %v2233_v36 }
 0x300   : > { %v1472_v47 = vadd.f32 %v1471_v42, %v1421_v41  ;;  %v1473_v48 = vadd.f32 %v1471_v42, %v1428_v37  ;;  %v1474_v49 = vadd.f32 %v1471_v42, %v1435_v39  ;;  %v1475_v50 = vadd.f32 %v1471_v42, %v1442_v40  ;;  %v2232_v37 = vld [vmem:[%s2888_s20 + $0x30] sm:$0xff]  ;;  %v2230_v39 = vld [vmem:[%s2888_s20 + $0x20] sm:$0xff]  ;;  %v2229_v40 = vld [vmem:[%s2888_s20 + $0x18] sm:$0xff] }
 0x301   : > { %v1336_v51 = vpop.f32.mrf.mxu3  ;;  %v1476_v52 = vadd.f32 %v1471_v42, %v1449_v43  ;;  %v1477_v53 = vadd.f32 %v1471_v42, %v1456_v46  ;;  %v1478_v54 = vadd.f32 %v1471_v42, %v1463_v44  ;;  %v1479_v55 = vadd.f32 %v1471_v42, %v1470_v45  ;;  %v2228_v41 = vld [vmem:[%s2888_s20 + $0x10] sm:$0xff]  ;;  %v2306_v42 = vld [vmem:[%s2885_s17] ss:$0 sm:$0xff] }
 0x302   : > { %v1480_v57 = vmax.f32 %v1472_v47, 0.0  ;;  %v1481_v58 = vmax.f32 %v1473_v48, 0.0  ;;  %v1482_v59 = vmax.f32 %v1474_v49, 0.0  ;;  %v1483_v60 = vmax.f32 %v1475_v50, 0.0  ;;  %v2227_v48 = vld [vmem:[%s2888_s20 + $0x8] sm:$0xff]  ;;  %v2226_v49 = vld [vmem:[%s2888_s20] sm:$0xff] }
 0x303   : > { %v1484_v61 = vmax.f32 %v1476_v52, 0.0  ;;  %v1485_v1 = vmax.f32 %v1477_v53, 0.0  ;;  %v1486_v63 = vmax.f32 %v1478_v54, 0.0  ;;  %v1487_v2 = vmax.f32 %v1479_v55, 0.0  ;;  %1763 = vmatpush.bf16.msrb.mxu2 %v2232_v37  ;;  %v2307_v50 = vld [vmem:[%s2887_s19] ss:$0 sm:$0xff] }
 0x304   : > { %v1488_v3 = vpack.c.bf16 %v1480_v57, %v1480_v57  ;;  %v1489_v4 = vpack.c.bf16 %v1481_v58, %v1481_v58  ;;  %v1490_v5 = vpack.c.bf16 %v1482_v59, %v1482_v59  ;;  %v1491_v6 = vpack.c.bf16 %v1483_v60, %v1483_v60 }
 0x305   : > { %v1492_v7 = vpack.c.bf16 %v1484_v61, %v1484_v61  ;;  %v1493_v8 = vpack.c.bf16 %v1485_v1, %v1485_v1  ;;  %v1494_v9 = vpack.c.bf16 %v1486_v63, %v1486_v63  ;;  %v1495_v12 = vpack.c.bf16 %v1487_v2, %v1487_v2 }
 0x306   : > { %v1525_v11 = vunpack.c.l.b16 %v1489_v4  ;;  %v1526_v13 = vunpack.c.l.b16 %v1490_v5  ;;  %v1527_v14 = vunpack.c.l.b16 %v1491_v6  ;;  %v1524_v16 = vunpack.c.l.b16 %v1488_v3 }
 0x307   : > { %v1528_v15 = vunpack.c.l.b16 %v1492_v7  ;;  %v1529_v17 = vunpack.c.l.b16 %v1493_v8  ;;  %v1530_v21 = vunpack.c.l.b16 %v1494_v9  ;;  %v1531_v62 = vunpack.c.l.b16 %v1495_v12  ;;  %1764 = vmatpush.bf16.msrb.mxu2 %v2231_v38 }
 0x308   : > { %v1532_v18 = vrot.slane %v1525_v11, 7  ;;  %v1534_v19 = vrot.slane %v1526_v13, 6  ;;  %v1536_v23 = vrot.slane %v1527_v14, 5  ;;  %v1792_v9 = vand.u32 127, %v811_v0 }
 0x309   : > { %v1538_v25 = vrot.slane %v1528_v15, 4  ;;  %v1540_v27 = vrot.slane %v1529_v17, 3  ;;  %v1542_v29 = vrot.slane %v1530_v21, 2  ;;  %v1544_v31 = vrot.slane %v1531_v62, 1 }
 0x30a   : > { %v1533_v22 = vsel %vm996_vm1, %v1532_v18, %v1524_v16  ;;  %vm1793_vm10 = vcmp.lt.s32.totalorder %v1792_v9, 1 }
 0x30b   : > { %v1535_v24 = vsel %vm999_vm2, %v1534_v19, %v1533_v22  ;;  %1765 = vmatpush.bf16.msrb.mxu2 %v2230_v39 }
 0x30c   : > { %v1537_v26 = vsel %vm1002_vm3, %v1536_v23, %v1535_v24 }
 0x30d   : > { %v1539_v28 = vsel %vm1005_vm4, %v1538_v25, %v1537_v26 }
 0x30e   : > { %v1541_v30 = vsel %vm1008_vm5, %v1540_v27, %v1539_v28 }
 0x30f   : > { %v1543_v32 = vsel %vm1011_vm6, %v1542_v29, %v1541_v30  ;;  %1766 = vmatpush.bf16.msrb.mxu2 %v2229_v40 }
 0x310   : > { %v1545_v33 = vsel %vm1014_vm7, %v1544_v31, %v1543_v32 }
 0x311   : > { %v1546_v34 = vpack.c.b16 %v1545_v33, %v1545_v33 }
 0x313   : > { %1604 = vmatmul.bf16.vlgmr.msrb.gmra.mxu0 %v1546_v34  ;;  %1767 = vmatpush.bf16.msrb.mxu2 %v2228_v41 }
 0x317   : > { %1768 = vmatpush.bf16.msrb.mxu2 %v2227_v48 }
 0x31b   : > { %1769 = vmatpush.bf16.msrb.mxu2 %v2226_v49 }
 0x390   : > { %v1605_v43 = vpop.f32.mrf.mxu0 }
 0x391   : > { %v1606_v44 = vadd.f32 %v2306_v42, %v1605_v43 }
 0x393   : > { %v1609_v45 = vmax.f32 %v1606_v44, 0.0 }
 0x395   : > { %v1610_v46 = vpack.c.bf16 %v1609_v45, %v1609_v45 }
 0x397   : > { %1687 = vmatmul.bf16.vlgmr.msrb.gmra.mxu1 %v1610_v46 }
 0x398   : > { %v1607_v47 = vpop.f32.mrf.mxu0 }
 0x414   : > { %v1688_v51 = vpop.f32.mrf.mxu1 }
 0x415   : > { %v1689_v52 = vadd.f32 %v2307_v50, %v1688_v51 }
 0x417   : > { %v1692_v53 = vmax.f32 %v1689_v52, 0.0 }
 0x419   : > { %v1693_v54 = vpack.c.bf16 %v1692_v53, %v1692_v53 }
 0x41b   : > { %1770 = vmatmul.bf16.vlgmr.msrb.gmra.mxu2 %v1693_v54 }
 0x41c   : > { %v1690_v55 = vpop.f32.mrf.mxu1 }
 0x49e   : > { %v1771_v57 = vpop.f32.mrf.mxu2 }
 0x49f   : > { %v1772_v58 = vadd.f32 %v2308_v56, %v1771_v57 }
 0x4a1   : > { %v1776_v59 = vand.u32 2147483647, %v1772_v58  ;;  %v1775_v10 = vmax.f32 %v1772_v58, 0.0 }
 0x4a3   : > { %v1777_v60 = vsub.f32 0.0, %v1776_v59 }
 0x4a5   : > { %v1778_v61 = vmul.f32 1.442695, %v1777_v60 }
 0x4a6   : > { %v1773_v1 = vpop.f32.mrf.mxu2 }
 0x4a7   : > { %2309 = vpow2.f32 %v1778_v61 }
 0x4ad   : > { %v2310_v63 = vpop.eup %2309 }
 0x4ae   : > { %v1780_v2 = vadd.f32 1.0, %v2310_v63  ;;  %v1783_v3 = vmul.f32 -0.5, %v2310_v63  ;;  %v1786_v5 = vand.u32 2147483647, %v2310_v63 }
 0x4b0   : > { %2311 = vlog2.f32 %v1780_v2  ;;  %v1784_v4 = vadd.f32 1.0, %v1783_v3  ;;  %vm1787_vm9 = vcmp.lt.f32.partialorder %v1786_v5, 0.0004427343 }
 0x4b2   : > { %v1785_v8 = vmul.f32 %v2310_v63, %v1784_v4 }
 0x4b6   : > { %v2312_v6 = vpop.eup %2311 }
 0x4b7   : > { %v1782_v7 = vmul.f32 0.6931472, %v2312_v6 }
 0x4b9   : > { %v1788_v12 = vsel %vm1787_vm9, %v1785_v8, %v1782_v7 }
 0x4ba   : > { %v1789_v11 = vadd.f32 %v1788_v12, %v1775_v10 }
 0x4bc   : > { %v1790_v13 = vadd.f32 0.1, %v1789_v11 }
 0x4be   : > { %v1794_v14 = vsel %vm1793_vm10, %v1772_v58, %v1790_v13 }
 0x4bf   : > { %1796 = vst.msk [vmem:[%s807_s23] sm:$0xff] %vm1795_vm11, %v1794_v14 }
 0x4c0 PF: > { %s2918_s5 = sld [smem:[#allocation13_spill]] }
 0x4c6   : > { %s35_s3 = sadd.s32 1, %s2918_s5  }
 0x4c7   : > { %p32_p7 = scmp.ge.s32.totalorder %s35_s3, 4  }
 0x4c9   :  { %34 = sbr.rel (!%p32_p7) target bundleno = 15 (0xf), region = 168 }
 0x4ce   :  { %1816 = vsyncpa [#allocation3], 1 }
 0x4cf   :  { %1818 = vsyncpa [#allocation3 + $0x1], 1 }
 0x4d0   :  { %1819 = vsyncpa [#allocation5], 1 }
 0x4d1   :  { %1820 = vsyncpa [#allocation8], 1 }

// kernel: tpu_custom_call.1
= control target key start
LH: loop header
LB: loop body
LE: loop exit
PB: predicated region body
PF: predicated region fallthrough
CT: control target
= control target key end

     0   :  { %s2868_s0 = inlined_call_operand.vmem [shape: f32[2,8,3], index: 0, kind: input, shape index: {}]   ;;  %s2869_s1 = inlined_call_operand.vmem [shape: f32[2,8,1], index: 1, kind: input, shape index: {}]   ;;  %s2870_s2 = inlined_call_operand.vmem [shape: f32[2,8,2], index: 2, kind: input, shape index: {}]   ;;  %s2871_s3 = inlined_call_operand.vmem [shape: f32[2,1,1], index: 3, kind: input, shape index: {}]   ;;  %s2872_s4 = inlined_call_operand.hbm [shape: f32[3,128], index: 4, kind: input, shape index: {}]   ;;  %s2873_s5 = inlined_call_operand.vmem [shape: f32[1,128], index: 5, kind: input, shape index: {}]   ;;  %s2874_s6 = inlined_call_operand.vmem [shape: bf16[128,128], index: 6, kind: input, shape index: {}]   ;;  %s2875_s7 = inlined_call_operand.vmem [shape: f32[1,128], index: 7, kind: input, shape index: {}]   ;;  %s2876_s8 = inlined_call_operand.vmem [shape: bf16[128,128], index: 8, kind: input, shape index: {}]   ;;  %s2877_s9 = inlined_call_operand.vmem [shape: f32[1,128], index: 9, kind: input, shape index: {}]   ;;  %s2878_s10 = inlined_call_operand.hbm [shape: bf16[128,128], index: 10, kind: input, shape index: {}]   ;;  %s2879_s11 = inlined_call_operand.vmem [shape: f32[1,128], index: 11, kind: input, shape index: {}]   ;;  %s2880_s12 = inlined_call_operand.hbm [shape: bf16[128,128], index: 12, kind: input, shape index: {}]   ;;  %s2881_s13 = inlined_call_operand.vmem [shape: f32[2,128], index: 13, kind: input, shape index: {}]   ;;  %s2882_s14 = inlined_call_operand.vmem [shape: f32[1,128], index: 14, kind: input, shape index: {}]   ;;  %s2883_s15 = inlined_call_operand.vmem [shape: f32[1,128], index: 15, kind: input, shape index: {}]   ;;  %s2884_s16 = inlined_call_operand.hbm [shape: bf16[128,128], index: 16, kind: input, shape index: {}]   ;;  %s2885_s17 = inlined_call_operand.vmem [shape: f32[1,128], index: 17, kind: input, shape index: {}]   ;;  %s2886_s18 = inlined_call_operand.hbm [shape: bf16[128,128], index: 18, kind: input, shape index: {}]   ;;  %s2887_s19 = inlined_call_operand.vmem [shape: f32[1,128], index: 19, kind: input, shape index: {}]   ;;  %s2888_s20 = inlined_call_operand.vmem [shape: bf16[128,2], index: 20, kind: input, shape index: {}]   ;;  %s2889_s21 = inlined_call_operand.vmem [shape: f32[1,2], index: 21, kind: input, shape index: {}]   ;;  %s2890_s22 = inlined_call_operand.vmem [shape: f32[16,2], index: 22, kind: output, shape index: {}]  }
   0x1   :  { %2893 = sst [smem:[#allocation14_spill]] %s2868_s0 }
   0x2   :  { %2894 = sst [smem:[#allocation15_spill]] %s2869_s1 }
   0x3   :  { %2895 = sst [smem:[#allocation16_spill]] %s2870_s2 }
   0x4   :  { %2896 = sst [smem:[#allocation17_spill]] %s2871_s3 }
   0x5   :  { %2897 = sst [smem:[#allocation18_spill]] %s2872_s4 }
   0x6   :  { %2898 = sst [smem:[#allocation19_spill]] %s2873_s5 }
   0x7   :  { %2899 = sst [smem:[#allocation20_spill]] %s2874_s6 }
   0x8   :  { %2900 = sst [smem:[#allocation21_spill]] %s2878_s10 }
   0x9   :  { %2901 = sst [smem:[#allocation22_spill]] %s2884_s16 }
   0xa   :  { %2902 = sst [smem:[#allocation23_spill]] %s2889_s21 }
   0xb   :  { %2903 = sst [smem:[#allocation24_spill]] %s2890_s22 }
   0xc   :  { %27 = vsyncpa [#allocation3], 0 }
   0xd   :  { %28 = vsyncpa [#allocation5], 0 }
   0xe   :  { %29 = vsyncpa [#allocation8], 0  ;;  %s2606_s3 = smov 0  }
   0xf LB: > { %2904 = sst [smem:[#allocation13_spill]] %s2481_s3  ;;  %s2615_s4 = sadd.s32 4294967295, %s2481_s3   ;;  %s2481_s3 = sphi %s2606_s3, %s35_s3  }
  0x10   : > { %s2905_s10 = sld [smem:[#allocation21_spill]]  ;;  %p1935_p0 = scmp.ge.s32.totalorder %s2481_s3, 1 }
  0x11   : > { %p548_p1 = scmp.lt.s32.totalorder %s2481_s3, 3  ;;  %p2270_p2 = scmp.eq.s32.totalorder %s2615_s4, 0 }
  0x12   : > { %s2483_s23 = smov [#allocation4]   ;;  %s2907_s16 = sld [smem:[#allocation22_spill]] }
  0x13   : > { %p2620_p3 = pnand %p1935_p0, %p548_p1  ;;  %s588_s1 = sshll.u32 %s2483_s23, 4  ;;  %s589_s1 = int_to_ptr.vmem [resolvable:$true] %s588_s1 }
  0x14   : > { %s2484_s26 = smov [#allocation7]   ;;  %s2909_s29 = sld [smem:[#allocation18_spill]] }
  0x15   : > { %p2254_p4 = pneg %p2620_p3  ;;  %s628_s2 = sshll.u32 %s2484_s26, 4  ;;  %s629_s2 = int_to_ptr.vmem [resolvable:$true] %s628_s2 }
  0x16   : > { %s586_s30 = sshll.u32 %s2905_s10, 4  ;;  %s2485_s10 = smov 64   ;;  %s587_s30 = int_to_ptr.hbm [resolvable:$true] %s586_s30 }
  0x17   : > { %p2631_p5 = pnand %p2270_p2, %p2254_p4  ;;  %s2486_s5 = smov 4  }
  0x18   : > { %s626_s6 = sshll.u32 %s2907_s16, 4  ;;  %s2487_s24 = smov [#allocation2]   ;;  %s627_s6 = int_to_ptr.hbm [resolvable:$true] %s626_s6 }
  0x19   : > { %2260 = dma.hbm_to_vmem [thread:$0]  (!%p2631_p5), %s587_s30, 1024, %s589_s1, [#allocation5], %s2485_s10, %s2485_s10, %s2486_s5  }
  0x1a   : > { %s560_s23 = sshll.u32 %s2909_s29, 4  ;;  %s562_s16 = sshll.u32 %s2487_s24, 4  ;;  %s561_s23 = int_to_ptr.hbm [resolvable:$true] %s560_s23  ;;  %s563_s16 = int_to_ptr.vmem [resolvable:$true] %s562_s16 }
  0x1b   : > { %2266 = dma.hbm_to_vmem [thread:$0]  (!%p2631_p5), %s627_s6, 1024, %s629_s2, [#allocation8], %s2485_s10, %s2485_s10, %s2486_s5  }
  0x1c   : > { %s603_s26 = sshll.u32 %s2880_s12, 4  ;;  %s643_s29 = sshll.u32 %s2886_s18, 4  ;;  %s604_s26 = int_to_ptr.hbm [resolvable:$true] %s603_s26  ;;  %s644_s29 = int_to_ptr.hbm [resolvable:$true] %s643_s29 }
  0x1d   : > { %2257 = dma.hbm_to_vmem [thread:$0]  (!%p2631_p5), %s561_s23, 64, %s563_s16, [#allocation3]  }
  0x1e   : > { %s2488_s21 = smov [#allocation6]   ;;  %s2489_s1 = smov [#allocation9]  }
  0x1f   : > { %s605_s30 = sshll.u32 %s2488_s21, 4  ;;  %s645_s6 = sshll.u32 %s2489_s1, 4  ;;  %s606_s30 = int_to_ptr.vmem [resolvable:$true] %s605_s30  ;;  %s646_s6 = int_to_ptr.vmem [resolvable:$true] %s645_s6 }
  0x20   : > { %2263 = dma.hbm_to_vmem [thread:$0]  (!%p2631_p5), %s604_s26, 1024, %s606_s30, [#allocation5], %s2485_s10, %s2485_s10, %s2486_s5  }
  0x21   : > { %2269 = dma.hbm_to_vmem [thread:$0]  (!%p2631_p5), %s644_s29, 1024, %s646_s6, [#allocation8], %s2485_s10, %s2485_s10, %s2486_s5  }
  0x22   : > { %697 = sbr.rel (%p2620_p3) target bundleno = 1216 (0x4c0), region = 108 }
  0x27   : > { %2468 = dma.done.wait (%p2270_p2), [#allocation3], 64  }
  0x28   : > { %2470 = vsyncadd (%p2270_p2), [#allocation3], 4294967232 }
  0x29   : > { %2472 = dma.done.wait (%p2270_p2), [#allocation5], 2048  }
  0x2a   : > { %2474 = vsyncadd (%p2270_p2), [#allocation5], 4294965248 }
  0x2b   : > { %2476 = dma.done.wait (%p2270_p2), [#allocation8], 2048  }
  0x2c   : > { %2478 = vsyncadd (%p2270_p2), [#allocation8], 4294965248  ;;  %v811_v0 = vlaneseq  ;;  %p789_p6 = scmp.lt.s32.totalorder %s2615_s4, 1  ;;  %s2910_s22 = sld [smem:[#allocation14_spill]]  ;;  %v2700_v20 = vld [vmem:[#allocation2] sm:$0x7] }
  0x2d   : > { %s2911_s2 = sld [smem:[#allocation16_spill]]  ;;  %vm874_vm0 = vcmask 1042432   ;;  %vm996_vm1 = vcmask 1041409   ;;  %vm999_vm2 = vcmask 1042434   ;;  %vm1002_vm3 = vcmask 1043459  }
  0x2e   : > { %v2670_v1 = vshrl.u32 %v811_v0, 7  ;;  %s2920_s4 = smov (!%p789_p6, %s2615_s4), 1  ;;  %s2912_s26 = sld [smem:[#allocation20_spill]]  ;;  %vm1005_vm4 = vcmask 1044484   ;;  %vm1008_vm5 = vcmask 1045509   ;;  %vm1011_vm6 = vcmask 1046534  }
  0x2f   : > { %s2678_s10 = sshll.u32 %s2920_s4, 3  ;;  %s2913_s27 = sld [smem:[#allocation19_spill]]  ;;  %vm1014_vm7 = vcmask 1047559   ;;  %vm1414_vm8 = vcmask 1041408   ;;  %vm1795_vm11 = vcmask 15360  }
  0x30   : > { %2297 = vset.pattern.permute.xlu1 %v2670_v1  ;;  %2296 = vset.pattern.permute.xlu0 %v2670_v1  ;;  %s2914_s6 = sld [smem:[#allocation15_spill]] }
  0x31   : > { %2298 = vset.pattern.permute.xlu2 %v2670_v1 }
  0x32   : > { %s792_s3 = scalar_lea.vmem %s2910_s22, %s2678_s10 }
  0x33   : > { %v808_v2 = vld [vmem:[%s792_s3] sm:$0xff]  ;;  %s800_s23 = scalar_lea.vmem %s2911_s2, %s2678_s10  ;;  %s2916_s3 = sld [smem:[#allocation23_spill]] }
  0x34   : > { %v817_v3 = vperm.slane %v808_v2, 1  ;;  %v810_v4 = vperm.slane %v808_v2, 0  ;;  %v838_v5 = vperm.slane %v808_v2, 4  ;;  %v824_v6 = vperm.slane %v808_v2, 2  ;;  %v2689_v11 = vld [vmem:[%s800_s23] sm:$0xff]  ;;  %v2185_v19 = vld [vmem:[%s2912_s26 + $0x38] sm:$0xff] }
  0x35   : > { %v831_v7 = vperm.slane %v808_v2, 3  ;;  %v845_v8 = vperm.slane %v808_v2, 5  ;;  %v852_v9 = vperm.slane %v808_v2, 6  ;;  %v859_v10 = vperm.slane %v808_v2, 7  ;;  %1066 = vmatpush.bf16.msra.mxu0 %v2185_v19  ;;  %v2184_v21 = vld [vmem:[%s2912_s26 + $0x30] sm:$0xff]  ;;  %v2183_v24 = vld [vmem:[%s2912_s26 + $0x28] sm:$0xff] }
  0x36   : > { %v1357_v12 = vperm.slane %v2689_v11, 1  ;;  %v1364_v13 = vperm.slane %v2689_v11, 2  ;;  %v1371_v14 = vperm.slane %v2689_v11, 3  ;;  %v1378_v15 = vperm.slane %v2689_v11, 4  ;;  %v2182_v27 = vld [vmem:[%s2912_s26 + $0x20] sm:$0xff]  ;;  %v2181_v30 = vld [vmem:[%s2912_s26 + $0x18] sm:$0xff]  ;;  %s796_s16 = scalar_lea.vmem %s2914_s6, %s2678_s10 }
  0x37   : > { %v1392_v16 = vperm.slane %v2689_v11, 6  ;;  %v1399_v17 = vperm.slane %v2689_v11, 7  ;;  %v2180_v37 = vld [vmem:[%s2912_s26 + $0x10] sm:$0xff]  ;;  %v2179_v46 = vld [vmem:[%s2912_s26 + $0x8] sm:$0xff]  ;;  %v2178_v57 = vld [vmem:[%s2912_s26] sm:$0xff]  ;;  %s2915_s23 = sld [smem:[#allocation17_spill]] }
  0x38   : > { %822 = vperm.xlu0 %2296, %v817_v3   ;;  %815 = vperm.xlu1 %2297, %v810_v4   ;;  %v2738_v62 = vld [vmem:[%s2913_s27] ss:$0 sm:$0xff]  ;;  %s2917_s2 = sld [smem:[#allocation24_spill]] }
  0x39   : > { %843 = vperm.xlu2 %2298, %v838_v5   ;;  %1067 = vmatpush.bf16.msra.mxu0 %v2184_v21 }
  0x3d   : > { %1068 = vmatpush.bf16.msra.mxu0 %v2183_v24  ;;  %s803_s5 = scalar_lea.vmem %s2915_s23, %s2920_s4 }
  0x3e   : > { %s807_s23 = scalar_lea.vmem %s2917_s2, %s2678_s10 }
  0x40   : > { %829 = vperm.xlu0 %2296, %v824_v6   ;;  %836 = vperm.xlu1 %2297, %v831_v7  }
  0x41   : > { %850 = vperm.xlu2 %2298, %v845_v8   ;;  %1069 = vmatpush.bf16.msra.mxu0 %v2182_v27 }
  0x45   : > { %1070 = vmatpush.bf16.msra.mxu0 %v2181_v30 }
  0x48   : > { %857 = vperm.xlu0 %2296, %v852_v9   ;;  %864 = vperm.xlu1 %2297, %v859_v10  }
  0x49   : > { %1071 = vmatpush.bf16.msra.mxu0 %v2180_v37 }
  0x4d   : > { %1072 = vmatpush.bf16.msra.mxu0 %v2179_v46 }
  0x50   : > { %1362 = vperm.xlu0 %2296, %v1357_v12   ;;  %1369 = vperm.xlu1 %2297, %v1364_v13  }
  0x51   : > { %1073 = vmatpush.bf16.msra.mxu0 %v2178_v57 }
  0x58   : > { %1376 = vperm.xlu0 %2296, %v1371_v14   ;;  %1383 = vperm.xlu1 %2297, %v1378_v15  }
  0x60   : > { %1397 = vperm.xlu0 %2296, %v1392_v16   ;;  %1404 = vperm.xlu1 %2297, %v1399_v17  }
  0x93   : > { %v844_v18 = vpop.permute.xlu2 %843 }
  0x94   : > { %v870_v22 = vmul.f32 %v844_v18, %v2700_v20 }
  0x96   : > { %v903_v25 = vsel %vm874_vm0, %v870_v22, 0.0 }
  0x97   : > { %v904_v28 = vrot.slane %v903_v25, 4 }
  0x99   : > { %v905_v31 = vadd.f32 %v904_v28, %v903_v25 }
  0x9b   : > { %v851_v23 = vpop.permute.xlu2 %850  ;;  %v906_v38 = vrot.slane %v905_v31, 2 }
  0x9c   : > { %v871_v26 = vmul.f32 %v851_v23, %v2700_v20 }
  0x9d   : > { %v907_v47 = vadd.f32 %v906_v38, %v905_v31 }
  0x9e   : > { %v910_v29 = vsel %vm874_vm0, %v871_v26, 0.0 }
  0x9f   : > { %v911_v32 = vrot.slane %v910_v29, 4  ;;  %v908_v58 = vrot.slane %v907_v47, 1 }
  0xa1   : > { %v912_v41 = vadd.f32 %v911_v32, %v910_v29  ;;  %v909_v8 = vadd.f32 %v908_v58, %v907_v47 }
  0xa3   : > { %v913_v48 = vrot.slane %v912_v41, 2  ;;  %v939_v26 = vadd.f32 %v2738_v62, %v909_v8 }
  0xa5   : > { %v914_v59 = vadd.f32 %v913_v48, %v912_v41  ;;  %v947_v38 = vmax.f32 %v939_v26, 0.0 }
  0xa7   : > { %v915_v12 = vrot.slane %v914_v59, 1 }
  0xa9   : > { %v916_v27 = vadd.f32 %v915_v12, %v914_v59 }
  0xaa   : > { %v823_v33 = vpop.permute.xlu0 %822  ;;  %v816_v34 = vpop.permute.xlu1 %815 }
  0xab   : > { %v867_v35 = vmul.f32 %v823_v33, %v2700_v20  ;;  %v866_v36 = vmul.f32 %v816_v34, %v2700_v20 }
  0xad   : > { %v882_v39 = vsel %vm874_vm0, %v867_v35, 0.0  ;;  %v875_v40 = vsel %vm874_vm0, %v866_v36, 0.0 }
  0xae   : > { %v883_v42 = vrot.slane %v882_v39, 4  ;;  %v876_v43 = vrot.slane %v875_v40, 4 }
  0xb0   : > { %v884_v44 = vadd.f32 %v883_v42, %v882_v39  ;;  %v877_v45 = vadd.f32 %v876_v43, %v875_v40  ;;  %v940_v39 = vadd.f32 %v2738_v62, %v916_v27  ;;  %v2192_v42 = vld [vmem:[%s2876_s8 + $0x30] sm:$0xff] }
  0xb2   : > { %v885_v49 = vrot.slane %v884_v44, 2  ;;  %v878_v50 = vrot.slane %v877_v45, 2  ;;  %v830_v51 = vpop.permute.xlu0 %829  ;;  %v837_v52 = vpop.permute.xlu1 %836 }
  0xb3   : > { %v868_v53 = vmul.f32 %v830_v51, %v2700_v20  ;;  %v869_v54 = vmul.f32 %v837_v52, %v2700_v20  ;;  %v955_v51 = vpack.c.bf16 %v947_v38, %v947_v38  ;;  %v948_v52 = vmax.f32 %v940_v39, 0.0  ;;  %v2196_v38 = vld [vmem:[#allocation4 + $0x10] sm:$0xff]  ;;  %v2303_v39 = vld [vmem:[%s2875_s7] ss:$0 sm:$0xff] }
  0xb4   : > { %v886_v55 = vadd.f32 %v885_v49, %v884_v44  ;;  %v879_v56 = vadd.f32 %v878_v50, %v877_v45 }
  0xb5   : > { %v889_v60 = vsel %vm874_vm0, %v868_v53, 0.0  ;;  %v896_v61 = vsel %vm874_vm0, %v869_v54, 0.0 }
  0xb6   : > { %v887_v63 = vrot.slane %v886_v55, 1  ;;  %v880_v2 = vrot.slane %v879_v56, 1  ;;  %v890_v3 = vrot.slane %v889_v60, 4  ;;  %v897_v4 = vrot.slane %v896_v61, 4 }
  0xb8   : > { %v888_v5 = vadd.f32 %v887_v63, %v886_v55  ;;  %v891_v6 = vadd.f32 %v890_v3, %v889_v60  ;;  %v898_v7 = vadd.f32 %v897_v4, %v896_v61  ;;  %v881_v9 = vadd.f32 %v880_v2, %v879_v56  ;;  %v2191_v55 = vld [vmem:[%s2876_s8 + $0x28] sm:$0xff] }
  0xb9   : > { %v991_v3 = vunpack.c.l.b16 %v955_v51  ;;  %v956_v4 = vpack.c.bf16 %v948_v52, %v948_v52  ;;  %v2207_v51 = vld [vmem:[#allocation6 + $0x28] sm:$0xff]  ;;  %v2304_v52 = vld [vmem:[%s2877_s9] ss:$0 sm:$0xff] }
  0xba   : > { %v936_v10 = vadd.f32 %v2738_v62, %v888_v5  ;;  %v892_v13 = vrot.slane %v891_v6, 2  ;;  %v899_v14 = vrot.slane %v898_v7, 2  ;;  %v858_v15 = vpop.permute.xlu0 %857  ;;  %v865_v16 = vpop.permute.xlu1 %864  ;;  %v935_v23 = vadd.f32 %v2738_v62, %v881_v9 }
  0xbb   : > { %v872_v17 = vmul.f32 %v858_v15, %v2700_v20  ;;  %v873_v18 = vmul.f32 %v865_v16, %v2700_v20  ;;  %v2193_v20 = vld [vmem:[%s2876_s8 + $0x38] sm:$0xff]  ;;  %v992_v15 = vunpack.c.l.b16 %v956_v4 }
  0xbc   : > { %v944_v19 = vmax.f32 %v936_v10, 0.0  ;;  %v893_v21 = vadd.f32 %v892_v13, %v891_v6  ;;  %v900_v22 = vadd.f32 %v899_v14, %v898_v7  ;;  %v943_v35 = vmax.f32 %v935_v23, 0.0  ;;  %1149 = vmatpush.bf16.msra.mxu1 %v2193_v20  ;;  %v2190_v6 = vld [vmem:[%s2876_s8 + $0x20] sm:$0xff]  ;;  %v2189_v16 = vld [vmem:[%s2876_s8 + $0x18] sm:$0xff] }
  0xbd   : > { %v917_v24 = vsel %vm874_vm0, %v872_v17, 0.0  ;;  %v924_v25 = vsel %vm874_vm0, %v873_v18, 0.0  ;;  %v1004_v17 = vrot.slane %v991_v3, 4  ;;  %v2200_v20 = vld [vmem:[#allocation4 + $0x30] sm:$0xff]  ;;  %v2305_v3 = vld [vmem:[%s2879_s11] ss:$0 sm:$0xff] }
  0xbe   : > { %v894_v28 = vrot.slane %v893_v21, 1  ;;  %v901_v29 = vrot.slane %v900_v22, 1  ;;  %v952_v30 = vpack.c.bf16 %v944_v19, %v944_v19  ;;  %v918_v31 = vrot.slane %v917_v24, 4 }
  0xbf   : > { %v925_v32 = vrot.slane %v924_v25, 4  ;;  %v951_v48 = vpack.c.bf16 %v943_v35, %v943_v35  ;;  %v2199_v35 = vld [vmem:[#allocation4 + $0x28] sm:$0xff] }
  0xc0   : > { %v895_v33 = vadd.f32 %v894_v28, %v893_v21  ;;  %v902_v34 = vadd.f32 %v901_v29, %v900_v22  ;;  %v919_v36 = vadd.f32 %v918_v31, %v917_v24  ;;  %v988_v43 = vunpack.c.l.b16 %v952_v30  ;;  %1150 = vmatpush.bf16.msra.mxu1 %v2192_v42 }
  0xc1   : > { %v926_v37 = vadd.f32 %v925_v32, %v924_v25  ;;  %v987_v61 = vunpack.c.l.b16 %v951_v48  ;;  %v1007_v24 = vrot.slane %v992_v15, 3  ;;  %v2188_v25 = vld [vmem:[%s2876_s8 + $0x10] sm:$0xff]  ;;  %v2187_v32 = vld [vmem:[%s2876_s8 + $0x8] sm:$0xff]  ;;  %v2209_v48 = vld [vmem:[#allocation6 + $0x38] sm:$0xff] }
  0xc2   : > { %v937_v40 = vadd.f32 %v2738_v62, %v895_v33  ;;  %v938_v41 = vadd.f32 %v2738_v62, %v902_v34  ;;  %v920_v44 = vrot.slane %v919_v36, 2  ;;  %v995_v56 = vrot.slane %v988_v43, 7  ;;  %v2186_v33 = vld [vmem:[%s2876_s8] sm:$0xff]  ;;  %1325 = vmatpush.bf16.msra.mxu3 %v2209_v48 }
  0xc3   : > { %v927_v45 = vrot.slane %v926_v37, 2  ;;  %v2201_v34 = vld [vmem:[#allocation4 + $0x38] sm:$0xff] }
  0xc4   : > { %v945_v46 = vmax.f32 %v937_v40, 0.0  ;;  %v946_v47 = vmax.f32 %v938_v41, 0.0  ;;  %v921_v49 = vadd.f32 %v920_v44, %v919_v36  ;;  %1151 = vmatpush.bf16.msra.mxu1 %v2191_v55  ;;  %v997_v10 = vsel %vm996_vm1, %v995_v56, %v987_v61  ;;  %1232 = vmatpush.bf16.msra.mxu2 %v2201_v34  ;;  %v2198_v36 = vld [vmem:[#allocation4 + $0x20] sm:$0xff]  ;;  %v2203_v61 = vld [vmem:[#allocation6 + $0x8] sm:$0xff] }
  0xc5   : > { %v928_v50 = vadd.f32 %v927_v45, %v926_v37  ;;  %v2197_v37 = vld [vmem:[#allocation4 + $0x18] sm:$0xff]  ;;  %v2195_v45 = vld [vmem:[#allocation4 + $0x8] sm:$0xff] }
  0xc6   : > { %v953_v53 = vpack.c.bf16 %v945_v46, %v945_v46  ;;  %v954_v54 = vpack.c.bf16 %v946_v47, %v946_v47  ;;  %v922_v57 = vrot.slane %v921_v49, 1  ;;  %v2194_v46 = vld [vmem:[#allocation4] sm:$0xff] }
  0xc7   : > { %v929_v58 = vrot.slane %v928_v50, 1  ;;  %v1245_v47 = vld [vmem:[%s796_s16] sm:$0xff] }
  0xc8   : > { %v989_v59 = vunpack.c.l.b16 %v953_v53  ;;  %v990_v60 = vunpack.c.l.b16 %v954_v54  ;;  %v923_v63 = vadd.f32 %v922_v57, %v921_v49  ;;  %1152 = vmatpush.bf16.msra.mxu1 %v2190_v6  ;;  %1233 = vmatpush.bf16.msra.mxu2 %v2200_v20  ;;  %v2490_v49 = vmov 0  }
  0xc9   : > { %v930_v2 = vadd.f32 %v929_v58, %v928_v50  ;;  %2299 = vset.pattern.permute.xlu2 %v2490_v49  ;;  %v2208_v50 = vld [vmem:[#allocation6 + $0x30] sm:$0xff]  ;;  %v2206_v58 = vld [vmem:[#allocation6 + $0x20] sm:$0xff] }
  0xca   : > { %v998_v5 = vrot.slane %v989_v59, 6  ;;  %v1001_v7 = vrot.slane %v990_v60, 5  ;;  %v941_v8 = vadd.f32 %v2738_v62, %v923_v63  ;;  %1248 = vperm.xlu2 %2299, %v1245_v47   ;;  %1326 = vmatpush.bf16.msra.mxu3 %v2208_v50  ;;  %v2205_v59 = vld [vmem:[#allocation6 + $0x18] sm:$0xff]  ;;  %v2204_v60 = vld [vmem:[#allocation6 + $0x10] sm:$0xff]  ;;  %v1350_v63 = vperm.slane %v2689_v11, 0  ;;  %v2211_v47 = vld [vmem:[#allocation7 + $0x8] sm:$0xff] }
  0xcb   : > { %v942_v9 = vadd.f32 %v2738_v62, %v930_v2  ;;  %v1385_v2 = vperm.slane %v2689_v11, 5 }
  0xcc   : > { %v1000_v12 = vsel %vm999_vm2, %v998_v5, %v997_v10  ;;  %v949_v13 = vmax.f32 %v941_v8, 0.0  ;;  %1153 = vmatpush.bf16.msra.mxu1 %v2189_v16  ;;  %1234 = vmatpush.bf16.msra.mxu2 %v2199_v35  ;;  %v1275_v8 = vld [vmem:[%s803_s5] sm:$0x1] }
  0xcd   : > { %v950_v14 = vmax.f32 %v942_v9, 0.0  ;;  %v1003_v21 = vsel %vm1002_vm3, %v1001_v7, %v1000_v12 }
  0xce   : > { %v957_v18 = vpack.c.bf16 %v949_v13, %v949_v13  ;;  %v1006_v23 = vsel %vm1005_vm4, %v1004_v17, %v1003_v21  ;;  %1327 = vmatpush.bf16.msra.mxu3 %v2207_v51  ;;  %v2217_v17 = vld [vmem:[#allocation7 + $0x38] sm:$0xff]  ;;  %v1370_v21 = vpop.permute.xlu1 %1369 }
  0xcf   : > { %v958_v19 = vpack.c.bf16 %v950_v14, %v950_v14  ;;  %v1009_v28 = vsel %vm1008_vm5, %v1007_v24, %v1006_v23  ;;  %1596 = vmatpush.bf16.msrb.mxu0 %v2217_v17  ;;  %v2215_v24 = vld [vmem:[#allocation7 + $0x28] sm:$0xff] }
  0xd0   : > { %v993_v62 = vunpack.c.l.b16 %v957_v18  ;;  %1154 = vmatpush.bf16.msra.mxu1 %v2188_v25  ;;  %1235 = vmatpush.bf16.msra.mxu2 %v2198_v36  ;;  %v2216_v18 = vld [vmem:[#allocation7 + $0x30] sm:$0xff]  ;;  %v2214_v25 = vld [vmem:[#allocation7 + $0x20] sm:$0xff] }
  0xd1   : > { %v994_v22 = vunpack.c.l.b16 %v958_v19  ;;  %v1363_v19 = vpop.permute.xlu0 %1362 }
  0xd2   : > { %v1010_v26 = vrot.slane %v993_v62, 2  ;;  %2300 = vset.pattern.permute.xlu2 %v2670_v1  ;;  %1328 = vmatpush.bf16.msra.mxu3 %v2206_v58  ;;  %v2202_v1 = vld [vmem:[#allocation6] sm:$0xff] }
  0xd3   : > { %v1013_v27 = vrot.slane %v994_v22, 1  ;;  %1597 = vmatpush.bf16.msrb.mxu0 %v2216_v18 }
  0xd4   : > { %v1012_v29 = vsel %vm1011_vm6, %v1010_v26, %v1009_v28  ;;  %1155 = vmatpush.bf16.msra.mxu1 %v2187_v32  ;;  %1236 = vmatpush.bf16.msra.mxu2 %v2197_v37  ;;  %v1349_v26 = vld [vmem:[%s2881_s13] sm:$0x3] }
  0xd5   : > { %v1015_v30 = vsel %vm1014_vm7, %v1013_v27, %v1012_v29  ;;  %v1408_v32 = vmul.f32 %v1370_v21, %v1349_v26 }
  0xd6   : > { %v1016_v31 = vpack.c.b16 %v1015_v30, %v1015_v30  ;;  %1329 = vmatpush.bf16.msra.mxu3 %v2205_v59  ;;  %v1384_v22 = vpop.permute.xlu1 %1383  ;;  %v2213_v30 = vld [vmem:[#allocation7 + $0x18] sm:$0xff] }
  0xd7   : > { %1598 = vmatpush.bf16.msrb.mxu0 %v2215_v24  ;;  %v1410_v20 = vmul.f32 %v1384_v22, %v1349_v26  ;;  %v1276_v24 = vld [vmem:[%s2883_s15] sm:$0x1] }
  0xd8   : > { %1074 = vmatmul.bf16.vlgmr.msra.gmra.mxu0 %v1016_v31  ;;  %1156 = vmatpush.bf16.msra.mxu1 %v2186_v33  ;;  %v1407_v31 = vmul.f32 %v1363_v19, %v1349_v26 }
  0xd9   : > { %1237 = vmatpush.bf16.msra.mxu2 %v2196_v38  ;;  %v1377_v62 = vpop.permute.xlu0 %1376  ;;  %v2212_v38 = vld [vmem:[#allocation7 + $0x10] sm:$0xff] }
  0xda   : > { %1330 = vmatpush.bf16.msra.mxu3 %v2204_v60  ;;  %1355 = vperm.xlu2 %2300, %v1350_v63   ;;  %v1409_v33 = vmul.f32 %v1377_v62, %v1349_v26 }
  0xdb   : > { %1599 = vmatpush.bf16.msrb.mxu0 %v2214_v25 }
  0xdd   : > { %1238 = vmatpush.bf16.msra.mxu2 %v2195_v45 }
  0xde   : > { %1331 = vmatpush.bf16.msra.mxu3 %v2203_v61  ;;  %v1405_v28 = vpop.permute.xlu1 %1404 }
  0xdf   : > { %v1413_v36 = vmul.f32 %v1405_v28, %v1349_v26  ;;  %1600 = vmatpush.bf16.msrb.mxu0 %v2213_v30  ;;  %v2223_v28 = vld [vmem:[#allocation9 + $0x28] sm:$0xff] }
  0xe1   : > { %1239 = vmatpush.bf16.msra.mxu2 %v2194_v46  ;;  %v1398_v27 = vpop.permute.xlu0 %1397  ;;  %v1464_v45 = vsel %vm1414_vm8, %v1413_v36, 0.0 }
  0xe2   : > { %1332 = vmatpush.bf16.msra.mxu3 %v2202_v1  ;;  %1390 = vperm.xlu2 %2300, %v1385_v2   ;;  %v1412_v35 = vmul.f32 %v1398_v27, %v1349_v26 }
  0xe3   : > { %1601 = vmatpush.bf16.msrb.mxu0 %v2212_v38  ;;  %v2222_v38 = vld [vmem:[#allocation9 + $0x20] sm:$0xff] }
  0xe7   : > { %1602 = vmatpush.bf16.msrb.mxu0 %v2211_v47 }
  0xea   : > { %2301 = vset.pattern.permute.xlu2 %v2490_v49 }
  0xeb   : > { %1341 = vperm.xlu2 %2301, %v1275_v8  }
 0x124   : > { %v1249_v5 = vpop.permute.xlu2 %1248 }
 0x134   : > { %v1356_v23 = vpop.permute.xlu2 %1355 }
 0x135   : > { %v1406_v34 = vmul.f32 %v1356_v23, %v1349_v26 }
 0x13c   : > { %v1391_v29 = vpop.permute.xlu2 %1390 }
 0x13d   : > { %v1411_v37 = vmul.f32 %v1391_v29, %v1349_v26 }
 0x13f   : > { %v1450_v46 = vsel %vm1414_vm8, %v1411_v37, 0.0 }
 0x155   : > { %v1075_v40 = vpop.f32.mrf.mxu0 }
 0x156   : > { %v1076_v41 = vadd.f32 %v2303_v39, %v1075_v40  ;;  %v1422_v39 = vsel %vm1414_vm8, %v1407_v31, 0.0  ;;  %v1429_v40 = vsel %vm1414_vm8, %v1408_v32, 0.0 }
 0x157   : > { %v1423_v48 = vrot.slane %v1422_v39, 4  ;;  %v1430_v49 = vrot.slane %v1429_v40, 4 }
 0x158   : > { %v1079_v42 = vmax.f32 %v1076_v41, 0.0  ;;  %v1436_v41 = vsel %vm1414_vm8, %v1409_v33, 0.0 }
 0x159   : > { %v1437_v50 = vrot.slane %v1436_v41, 4  ;;  %v1431_v58 = vadd.f32 %v1430_v49, %v1429_v40 }
 0x15a   : > { %v1080_v43 = vpack.c.bf16 %v1079_v42, %v1079_v42  ;;  %v1415_v42 = vsel %vm1414_vm8, %v1406_v34, 0.0 }
 0x15b   : > { %v1416_v51 = vrot.slane %v1415_v42, 4  ;;  %v1438_v59 = vadd.f32 %v1437_v50, %v1436_v41 }
 0x15c   : > { %1157 = vmatmul.bf16.vlgmr.msra.gmra.mxu1 %v1080_v43  ;;  %v1443_v43 = vsel %vm1414_vm8, %v1410_v20, 0.0 }
 0x15d   : > { %v1077_v44 = vpop.f32.mrf.mxu0  ;;  %v1417_v60 = vadd.f32 %v1416_v51, %v1415_v42 }
 0x15e   : > { %v1457_v44 = vsel %vm1414_vm8, %v1412_v35, 0.0 }
 0x1d9   : > { %v1158_v53 = vpop.f32.mrf.mxu1 }
 0x1da   : > { %v1159_v54 = vadd.f32 %v2304_v52, %v1158_v53  ;;  %v1444_v52 = vrot.slane %v1443_v43, 4  ;;  %v1458_v53 = vrot.slane %v1457_v44, 4 }
 0x1dc   : > { %v1162_v55 = vmax.f32 %v1159_v54, 0.0  ;;  %v1465_v54 = vrot.slane %v1464_v45, 4  ;;  %v1445_v61 = vadd.f32 %v1444_v52, %v1443_v43  ;;  %v1459_v1 = vadd.f32 %v1458_v53, %v1457_v44 }
 0x1de   : > { %v1163_v56 = vpack.c.bf16 %v1162_v55, %v1162_v55  ;;  %v1451_v55 = vrot.slane %v1450_v46, 4  ;;  %v1466_v63 = vadd.f32 %v1465_v54, %v1464_v45  ;;  %v1446_v8 = vrot.slane %v1445_v61, 2 }
 0x1e0   : > { %1240 = vmatmul.bf16.vlgmr.msra.gmra.mxu2 %v1163_v56  ;;  %v2210_v56 = vld [vmem:[#allocation7] sm:$0xff]  ;;  %v1452_v2 = vadd.f32 %v1451_v55, %v1450_v46  ;;  %v1447_v21 = vadd.f32 %v1446_v8, %v1445_v61 }
 0x1e1   : > { %v1160_v57 = vpop.f32.mrf.mxu1  ;;  %1603 = vmatpush.bf16.msrb.mxu0 %v2210_v56  ;;  %v2221_v56 = vld [vmem:[#allocation9 + $0x18] sm:$0xff] }
 0x1e2   : > { %v1424_v57 = vadd.f32 %v1423_v48, %v1422_v39  ;;  %v1448_v33 = vrot.slane %v1447_v21, 1 }
 0x1e4   : > { %v1449_v43 = vadd.f32 %v1448_v33, %v1447_v21 }
 0x263   : > { %v1241_v4 = vpop.f32.mrf.mxu2 }
 0x264   : > { %v1242_v6 = vadd.f32 %v2305_v3, %v1241_v4  ;;  %v1425_v3 = vrot.slane %v1424_v57, 2  ;;  %v1342_v4 = vpop.permute.xlu2 %1341 }
 0x266   : > { %v1251_v7 = vmul.f32 %v1249_v5, %v1242_v6  ;;  %v1432_v5 = vrot.slane %v1431_v58, 2  ;;  %v1439_v6 = vrot.slane %v1438_v59, 2 }
 0x268   : > { %v1252_v9 = vrot.slane %v1251_v7, 4  ;;  %v1433_v17 = vadd.f32 %v1432_v5, %v1431_v58  ;;  %v1440_v18 = vadd.f32 %v1439_v6, %v1438_v59 }
 0x26a   : > { %v1253_v10 = vadd.f32 %v1252_v9, %v1251_v7  ;;  %v1418_v7 = vrot.slane %v1417_v60, 2  ;;  %v1460_v9 = vrot.slane %v1459_v1, 2  ;;  %v1434_v29 = vrot.slane %v1433_v17, 1 }
 0x26b   : > { %v1243_v12 = vpop.f32.mrf.mxu2  ;;  %v1441_v30 = vrot.slane %v1440_v18, 1 }
 0x26c   : > { %v1254_v11 = vrot.slane %v1253_v10, 2  ;;  %v1453_v12 = vrot.slane %v1452_v2, 2  ;;  %v1419_v19 = vadd.f32 %v1418_v7, %v1417_v60  ;;  %v1461_v62 = vadd.f32 %v1460_v9, %v1459_v1 }
 0x26d   : > { %v1435_v39 = vadd.f32 %v1434_v29, %v1433_v17  ;;  %v1442_v40 = vadd.f32 %v1441_v30, %v1440_v18 }
 0x26e   : > { %v1255_v13 = vadd.f32 %v1254_v11, %v1253_v10  ;;  %v1467_v10 = vrot.slane %v1466_v63, 2  ;;  %v2225_v11 = vld [vmem:[#allocation9 + $0x38] sm:$0xff]  ;;  %v1454_v23 = vadd.f32 %v1453_v12, %v1452_v2  ;;  %v1420_v31 = vrot.slane %v1419_v19, 1 }
 0x26f   : > { %1679 = vmatpush.bf16.msrb.mxu1 %v2225_v11  ;;  %v1462_v34 = vrot.slane %v1461_v62, 1 }
 0x270   : > { %v1256_v14 = vrot.slane %v1255_v13, 1  ;;  %v1468_v22 = vadd.f32 %v1467_v10, %v1466_v63  ;;  %v1455_v35 = vrot.slane %v1454_v23, 1  ;;  %v1421_v41 = vadd.f32 %v1420_v31, %v1419_v19  ;;  %v2220_v10 = vld [vmem:[#allocation9 + $0x10] sm:$0xff] }
 0x271   : > { %v1463_v44 = vadd.f32 %v1462_v34, %v1461_v62 }
 0x272   : > { %v1257_v15 = vadd.f32 %v1256_v14, %v1255_v13  ;;  %v1344_v13 = vperm.slane %v1342_v4, 0  ;;  %v1426_v14 = vadd.f32 %v1425_v3, %v1424_v57  ;;  %v1469_v20 = vrot.slane %v1468_v22, 1 }
 0x273   : > { %v1456_v46 = vadd.f32 %v1455_v35, %v1454_v23  ;;  %v2218_v35 = vld [vmem:[#allocation9] sm:$0xff] }
 0x274   : > { %v1258_v16 = vpack.c.bf16 %v1257_v15, %v1257_v15  ;;  %v1338_v15 = vld [vmem:[%s2882_s14] sm:$0x1]  ;;  %v1427_v26 = vrot.slane %v1426_v14, 1  ;;  %v1470_v45 = vadd.f32 %v1469_v20, %v1468_v22  ;;  %v2219_v20 = vld [vmem:[#allocation9 + $0x8] sm:$0xff] }
 0x275   : > { %v1345_v25 = vmul.f32 %v1344_v13, %v1338_v15 }
 0x276   : > { %1333 = vmatmul.bf16.vlgmr.msra.gmra.mxu3 %v1258_v16  ;;  %v2224_v16 = vld [vmem:[#allocation9 + $0x30] sm:$0xff]  ;;  %v1428_v37 = vadd.f32 %v1427_v26, %v1426_v14 }
 0x277   : > { %1680 = vmatpush.bf16.msrb.mxu1 %v2224_v16 }
 0x27b   : > { %1681 = vmatpush.bf16.msrb.mxu1 %v2223_v28 }
 0x27f   : > { %1682 = vmatpush.bf16.msrb.mxu1 %v2222_v38  ;;  %v2231_v38 = vld [vmem:[%s2888_s20 + $0x28] sm:$0xff] }
 0x283   : > { %1683 = vmatpush.bf16.msrb.mxu1 %v2221_v56  ;;  %v2308_v56 = vld [vmem:[%s2916_s3] ss:$0 sm:$0xff] }
 0x287   : > { %1684 = vmatpush.bf16.msrb.mxu1 %v2220_v10 }
 0x28b   : > { %1685 = vmatpush.bf16.msrb.mxu1 %v2219_v20 }
 0x28f   : > { %1686 = vmatpush.bf16.msrb.mxu1 %v2218_v35 }
 0x2f9   : > { %v1334_v27 = vpop.f32.mrf.mxu3 }
 0x2fa   : > { %v1335_v32 = vadd.f32 %v1334_v27, %v1276_v24 }
 0x2fc   : > { %v1347_v36 = vadd.f32 %v1345_v25, %v1335_v32 }
 0x2fe   : > { %v1471_v42 = vperm.slane %v1347_v36, 0  ;;  %v2233_v36 = vld [vmem:[%s2888_s20 + $0x38] sm:$0xff] }
 0x2ff   : > { %1762 = vmatpush.bf16.msrb.mxu2 %v2233_v36 }
 0x300   : > { %v1472_v47 = vadd.f32 %v1471_v42, %v1421_v41  ;;  %v1473_v48 = vadd.f32 %v1471_v42, %v1428_v37  ;;  %v1474_v49 = vadd.f32 %v1471_v42, %v1435_v39  ;;  %v1475_v50 = vadd.f32 %v1471_v42, %v1442_v40  ;;  %v2232_v37 = vld [vmem:[%s2888_s20 + $0x30] sm:$0xff]  ;;  %v2230_v39 = vld [vmem:[%s2888_s20 + $0x20] sm:$0xff]  ;;  %v2229_v40 = vld [vmem:[%s2888_s20 + $0x18] sm:$0xff] }
 0x301   : > { %v1336_v51 = vpop.f32.mrf.mxu3  ;;  %v1476_v52 = vadd.f32 %v1471_v42, %v1449_v43  ;;  %v1477_v53 = vadd.f32 %v1471_v42, %v1456_v46  ;;  %v1478_v54 = vadd.f32 %v1471_v42, %v1463_v44  ;;  %v1479_v55 = vadd.f32 %v1471_v42, %v1470_v45  ;;  %v2228_v41 = vld [vmem:[%s2888_s20 + $0x10] sm:$0xff]  ;;  %v2306_v42 = vld [vmem:[%s2885_s17] ss:$0 sm:$0xff] }
 0x302   : > { %v1480_v57 = vmax.f32 %v1472_v47, 0.0  ;;  %v1481_v58 = vmax.f32 %v1473_v48, 0.0  ;;  %v1482_v59 = vmax.f32 %v1474_v49, 0.0  ;;  %v1483_v60 = vmax.f32 %v1475_v50, 0.0  ;;  %v2227_v48 = vld [vmem:[%s2888_s20 + $0x8] sm:$0xff]  ;;  %v2226_v49 = vld [vmem:[%s2888_s20] sm:$0xff] }
 0x303   : > { %v1484_v61 = vmax.f32 %v1476_v52, 0.0  ;;  %v1485_v1 = vmax.f32 %v1477_v53, 0.0  ;;  %v1486_v63 = vmax.f32 %v1478_v54, 0.0  ;;  %v1487_v2 = vmax.f32 %v1479_v55, 0.0  ;;  %1763 = vmatpush.bf16.msrb.mxu2 %v2232_v37  ;;  %v2307_v50 = vld [vmem:[%s2887_s19] ss:$0 sm:$0xff] }
 0x304   : > { %v1488_v3 = vpack.c.bf16 %v1480_v57, %v1480_v57  ;;  %v1489_v4 = vpack.c.bf16 %v1481_v58, %v1481_v58  ;;  %v1490_v5 = vpack.c.bf16 %v1482_v59, %v1482_v59  ;;  %v1491_v6 = vpack.c.bf16 %v1483_v60, %v1483_v60 }
 0x305   : > { %v1492_v7 = vpack.c.bf16 %v1484_v61, %v1484_v61  ;;  %v1493_v8 = vpack.c.bf16 %v1485_v1, %v1485_v1  ;;  %v1494_v9 = vpack.c.bf16 %v1486_v63, %v1486_v63  ;;  %v1495_v12 = vpack.c.bf16 %v1487_v2, %v1487_v2 }
 0x306   : > { %v1525_v11 = vunpack.c.l.b16 %v1489_v4  ;;  %v1526_v13 = vunpack.c.l.b16 %v1490_v5  ;;  %v1527_v14 = vunpack.c.l.b16 %v1491_v6  ;;  %v1524_v16 = vunpack.c.l.b16 %v1488_v3 }
 0x307   : > { %v1528_v15 = vunpack.c.l.b16 %v1492_v7  ;;  %v1529_v17 = vunpack.c.l.b16 %v1493_v8  ;;  %v1530_v21 = vunpack.c.l.b16 %v1494_v9  ;;  %v1531_v62 = vunpack.c.l.b16 %v1495_v12  ;;  %1764 = vmatpush.bf16.msrb.mxu2 %v2231_v38 }
 0x308   : > { %v1532_v18 = vrot.slane %v1525_v11, 7  ;;  %v1534_v19 = vrot.slane %v1526_v13, 6  ;;  %v1536_v23 = vrot.slane %v1527_v14, 5  ;;  %v1792_v9 = vand.u32 127, %v811_v0 }
 0x309   : > { %v1538_v25 = vrot.slane %v1528_v15, 4  ;;  %v1540_v27 = vrot.slane %v1529_v17, 3  ;;  %v1542_v29 = vrot.slane %v1530_v21, 2  ;;  %v1544_v31 = vrot.slane %v1531_v62, 1 }
 0x30a   : > { %v1533_v22 = vsel %vm996_vm1, %v1532_v18, %v1524_v16  ;;  %vm1793_vm10 = vcmp.lt.s32.totalorder %v1792_v9, 1 }
 0x30b   : > { %v1535_v24 = vsel %vm999_vm2, %v1534_v19, %v1533_v22  ;;  %1765 = vmatpush.bf16.msrb.mxu2 %v2230_v39 }
 0x30c   : > { %v1537_v26 = vsel %vm1002_vm3, %v1536_v23, %v1535_v24 }
 0x30d   : > { %v1539_v28 = vsel %vm1005_vm4, %v1538_v25, %v1537_v26 }
 0x30e   : > { %v1541_v30 = vsel %vm1008_vm5, %v1540_v27, %v1539_v28 }
 0x30f   : > { %v1543_v32 = vsel %vm1011_vm6, %v1542_v29, %v1541_v30  ;;  %1766 = vmatpush.bf16.msrb.mxu2 %v2229_v40 }
 0x310   : > { %v1545_v33 = vsel %vm1014_vm7, %v1544_v31, %v1543_v32 }
 0x311   : > { %v1546_v34 = vpack.c.b16 %v1545_v33, %v1545_v33 }
 0x313   : > { %1604 = vmatmul.bf16.vlgmr.msrb.gmra.mxu0 %v1546_v34  ;;  %1767 = vmatpush.bf16.msrb.mxu2 %v2228_v41 }
 0x317   : > { %1768 = vmatpush.bf16.msrb.mxu2 %v2227_v48 }
 0x31b   : > { %1769 = vmatpush.bf16.msrb.mxu2 %v2226_v49 }
 0x390   : > { %v1605_v43 = vpop.f32.mrf.mxu0 }
 0x391   : > { %v1606_v44 = vadd.f32 %v2306_v42, %v1605_v43 }
 0x393   : > { %v1609_v45 = vmax.f32 %v1606_v44, 0.0 }
 0x395   : > { %v1610_v46 = vpack.c.bf16 %v1609_v45, %v1609_v45 }
 0x397   : > { %1687 = vmatmul.bf16.vlgmr.msrb.gmra.mxu1 %v1610_v46 }
 0x398   : > { %v1607_v47 = vpop.f32.mrf.mxu0 }
 0x414   : > { %v1688_v51 = vpop.f32.mrf.mxu1 }
 0x415   : > { %v1689_v52 = vadd.f32 %v2307_v50, %v1688_v51 }
 0x417   : > { %v1692_v53 = vmax.f32 %v1689_v52, 0.0 }
 0x419   : > { %v1693_v54 = vpack.c.bf16 %v1692_v53, %v1692_v53 }
 0x41b   : > { %1770 = vmatmul.bf16.vlgmr.msrb.gmra.mxu2 %v1693_v54 }
 0x41c   : > { %v1690_v55 = vpop.f32.mrf.mxu1 }
 0x49e   : > { %v1771_v57 = vpop.f32.mrf.mxu2 }
 0x49f   : > { %v1772_v58 = vadd.f32 %v2308_v56, %v1771_v57 }
 0x4a1   : > { %v1776_v59 = vand.u32 2147483647, %v1772_v58  ;;  %v1775_v10 = vmax.f32 %v1772_v58, 0.0 }
 0x4a3   : > { %v1777_v60 = vsub.f32 0.0, %v1776_v59 }
 0x4a5   : > { %v1778_v61 = vmul.f32 1.442695, %v1777_v60 }
 0x4a6   : > { %v1773_v1 = vpop.f32.mrf.mxu2 }
 0x4a7   : > { %2309 = vpow2.f32 %v1778_v61 }
 0x4ad   : > { %v2310_v63 = vpop.eup %2309 }
 0x4ae   : > { %v1780_v2 = vadd.f32 1.0, %v2310_v63  ;;  %v1783_v3 = vmul.f32 -0.5, %v2310_v63  ;;  %v1786_v5 = vand.u32 2147483647, %v2310_v63 }
 0x4b0   : > { %2311 = vlog2.f32 %v1780_v2  ;;  %v1784_v4 = vadd.f32 1.0, %v1783_v3  ;;  %vm1787_vm9 = vcmp.lt.f32.partialorder %v1786_v5, 0.0004427343 }
 0x4b2   : > { %v1785_v8 = vmul.f32 %v2310_v63, %v1784_v4 }
 0x4b6   : > { %v2312_v6 = vpop.eup %2311 }
 0x4b7   : > { %v1782_v7 = vmul.f32 0.6931472, %v2312_v6 }
 0x4b9   : > { %v1788_v12 = vsel %vm1787_vm9, %v1785_v8, %v1782_v7 }
 0x4ba   : > { %v1789_v11 = vadd.f32 %v1788_v12, %v1775_v10 }
 0x4bc   : > { %v1790_v13 = vadd.f32 0.1, %v1789_v11 }
 0x4be   : > { %v1794_v14 = vsel %vm1793_vm10, %v1772_v58, %v1790_v13 }
 0x4bf   : > { %1796 = vst.msk [vmem:[%s807_s23] sm:$0xff] %vm1795_vm11, %v1794_v14 }
 0x4c0 PF: > { %s2918_s5 = sld [smem:[#allocation13_spill]] }
 0x4c6   : > { %s35_s3 = sadd.s32 1, %s2918_s5  }
 0x4c7   : > { %p32_p7 = scmp.ge.s32.totalorder %s35_s3, 4  }
 0x4c9   :  { %34 = sbr.rel (!%p32_p7) target bundleno = 15 (0xf), region = 168 }
 0x4ce   :  { %1816 = vsyncpa [#allocation3], 1 }
 0x4cf   :  { %1818 = vsyncpa [#allocation3 + $0x1], 1 }
 0x4d0   :  { %1819 = vsyncpa [#allocation5], 1 }
 0x4d1   :  { %1820 = vsyncpa [#allocation8], 1 }

</bundles_post_ra>
